<compile_context>
chip_gen: v6e
topology: v6e:2x2x1
jax: 0.10.0
libtpu: 0.0.40
codegen_flags: <defaults>
</compile_context>

<pallas_src>
import jax
import jax.numpy as jnp
from jax import lax
from jax.experimental import pallas as pl
from jax.experimental.pallas import tpu as pltpu

_BN_EPS = 1e-5
_MAX_TILE_M = 512                    # lanes per M tile (256-512 is the sweet spot)
_VMEM_LIMIT = 32 * 1024 * 1024       # explicit; fits v7x (64 MiB phys / 32 MiB scoped)
_MM_DTYPE = jnp.bfloat16             # MXU input dtype; accumulation stays f32


def _round_up(x, m):
    return (x + m - 1) // m * m


def _choose_tile(m):
    mp = _round_up(m, 128)
    tm = min(_MAX_TILE_M, mp)
    return tm, _round_up(mp, tm)


def _compiler_params():
    return pltpu.CompilerParams(dimension_semantics=("parallel",),
                                vmem_limit_bytes=_VMEM_LIMIT)


# ---------------------------------------------------------------------------
# Pallas kernels
# ---------------------------------------------------------------------------
def _conv_bnstats_kernel(p_ref, w_ref, o_ref, s_ref):
    # (Cout, K) @ (K, tm) -> (Cout, tm); M (batch*spatial) on the lane axis.
    acc = jnp.dot(w_ref[...], p_ref[...], preferred_element_type=jnp.float32)
    o_ref[...] = acc.astype(o_ref.dtype)
    # Fused BatchNorm partial statistics (per-channel sum / sum-of-squares).
    ssum = jnp.sum(acc, axis=1, keepdims=True)         # (Cout, 1)
    ssq = jnp.sum(acc * acc, axis=1, keepdims=True)    # (Cout, 1)
    s_ref[...] = jnp.concatenate([ssum, ssq], axis=1)  # (Cout, 2)


def _conv_tanh_kernel(p_ref, w_ref, o_ref):
    acc = jnp.dot(w_ref[...], p_ref[...], preferred_element_type=jnp.float32)
    o_ref[...] = jnp.tanh(acc)


def _scale_shift_relu_kernel(x_ref, sc_ref, sh_ref, o_ref):
    y = x_ref[...].astype(jnp.float32) * sc_ref[...] + sh_ref[...]
    o_ref[...] = jnp.maximum(y, 0.0).astype(o_ref.dtype)


# ---------------------------------------------------------------------------
# pallas_call wrappers (tiled over M, double-buffered by BlockSpec pipeline)
# ---------------------------------------------------------------------------
def conv_matmul_bnstats(patches, w_t, *, tm):
    k, mp = patches.shape
    cout, k2 = w_t.shape
    assert k == k2 and mp % tm == 0
    nt = mp // tm
    return pl.pallas_call(
        _conv_bnstats_kernel,
        out_shape=(jax.ShapeDtypeStruct((cout, mp), _MM_DTYPE),
                   jax.ShapeDtypeStruct((nt * cout, 2), jnp.float32)),
        grid=(nt,),
        in_specs=[pl.BlockSpec((k, tm), lambda j: (0, j)),
                  pl.BlockSpec((cout, k), lambda j: (0, 0))],
        out_specs=(pl.BlockSpec((cout, tm), lambda j: (0, j)),
                   pl.BlockSpec((cout, 2), lambda j: (j, 0))),
        compiler_params=_compiler_params(),
    )(patches, w_t)


def conv_matmul_tanh(patches, w_t, *, tm):
    k, mp = patches.shape
    cout, k2 = w_t.shape
    assert k == k2 and mp % tm == 0
    nt = mp // tm
    return pl.pallas_call(
        _conv_tanh_kernel,
        out_shape=jax.ShapeDtypeStruct((cout, mp), jnp.float32),
        grid=(nt,),
        in_specs=[pl.BlockSpec((k, tm), lambda j: (0, j)),
                  pl.BlockSpec((cout, k), lambda j: (0, 0))],
        out_specs=pl.BlockSpec((cout, tm), lambda j: (0, j)),
        compiler_params=_compiler_params(),
    )(patches, w_t)


def scale_shift_relu(y, scale, shift, *, tm):
    c, mp = y.shape
    nt = mp // tm
    return pl.pallas_call(
        _scale_shift_relu_kernel,
        out_shape=jax.ShapeDtypeStruct((c, mp), _MM_DTYPE),
        grid=(nt,),
        in_specs=[pl.BlockSpec((c, tm), lambda j: (0, j)),
                  pl.BlockSpec((c, 1), lambda j: (0, 0)),
                  pl.BlockSpec((c, 1), lambda j: (0, 0))],
        out_specs=pl.BlockSpec((c, tm), lambda j: (0, j)),
        compiler_params=_compiler_params(),
    )(y, scale.reshape(c, 1), shift.reshape(c, 1))


# ---------------------------------------------------------------------------
# JAX glue: ConvTranspose2d = dilate + pad + im2col (channels-first layout)
# ---------------------------------------------------------------------------
def _dilate_and_pad(x, stride, k, p):
    # x: (C, N, H, W). Insert (stride-1) zeros between samples, pad k-1-p.
    pad = k - 1 - p
    cfg = ((0, 0, 0), (0, 0, 0), (pad, pad, stride - 1), (pad, pad, stride - 1))
    return lax.pad(x, jnp.zeros((), x.dtype), cfg)


def _im2col(xp, kh, kw):
    # xp: (C, N, Hp, Wp) -> patches (kh*kw*C, N*OH*OW), tap-major K ordering.
    c, n, hp, wp = xp.shape
    oh, ow = hp - kh + 1, wp - kw + 1
    taps = [xp[:, :, i:i + oh, j:j + ow] for i in range(kh) for j in range(kw)]
    p = jnp.concatenate(taps, axis=0)                  # (kh*kw*C, N, OH, OW)
    return p.reshape(kh * kw * c, n * oh * ow), (n, oh, ow)


def conv_transpose_bn_relu(x, w_t, gamma, beta, *, kh, kw, stride, padding):
    # x: (Cin, N, H, W) bf16 ; w_t: (Cout, kh*kw*Cin) bf16
    cout = w_t.shape[0]
    xp = _dilate_and_pad(x, stride, kh, padding)
    patches, (n, oh, ow) = _im2col(xp, kh, kw)
    m = n * oh * ow
    tm, mp = _choose_tile(m)
    patches = jnp.pad(patches, ((0, 0), (0, mp - m)))          # zero cols -> no stat bias
    y, part = conv_matmul_bnstats(patches, w_t, tm=tm)         # (Cout,Mp), (nt*Cout,2)
    tot = jnp.sum(part.reshape(-1, cout, 2), axis=0)           # (Cout, 2)
    mean = tot[:, 0] / m
    var = tot[:, 1] / m - mean * mean                          # biased batch variance
    scale = gamma * lax.rsqrt(var + _BN_EPS)
    shift = beta - mean * scale
    a = scale_shift_relu(y, scale, shift, tm=tm)               # (Cout, Mp) bf16
    return a[:, :m].reshape(cout, n, oh, ow)


def conv_transpose_tanh(x, w_t, *, kh, kw, stride, padding):
    cout = w_t.shape[0]
    cout_p = _round_up(cout, 8)        # keep the sublane dim well-formed for nc=1
    if cout_p != cout:
        w_t = jnp.pad(w_t, ((0, cout_p - cout), (0, 0)))
    xp = _dilate_and_pad(x, stride, kh, padding)
    patches, (n, oh, ow) = _im2col(xp, kh, kw)
    m = n * oh * ow
    tm, mp = _choose_tile(m)
    patches = jnp.pad(patches, ((0, 0), (0, mp - m)))
    y = conv_matmul_tanh(patches, w_t, tm=tm)                  # (Cout_p, Mp) f32
    return y[:cout, :m].reshape(cout, n, oh, ow)


# ---------------------------------------------------------------------------
# Generator forward (takes preprocessed params)
# ---------------------------------------------------------------------------
def generator_forward(x_nchw, prep):
    # NCHW -> (C, N, H, W): channels on sublanes, flattened spatial on lanes.
    x = jnp.transpose(x_nchw, (1, 0, 2, 3)).astype(_MM_DTYPE)
    x = conv_transpose_bn_relu(x, prep['w1'], prep['g1'], prep['b1'],
                               kh=4, kw=4, stride=1, padding=0)   # (ngf*4, N, 4, 4)
    x = conv_transpose_bn_relu(x, prep['w2'], prep['g2'], prep['b2'],
                               kh=3, kw=3, stride=2, padding=1)   # (ngf*2, N, 7, 7)
    x = conv_transpose_bn_relu(x, prep['w3'], prep['g3'], prep['b3'],
                               kh=4, kw=4, stride=2, padding=1)   # (ngf,   N, 14, 14)
    x = conv_transpose_tanh(x, prep['w4'], kh=4, kw=4, stride=2,
                            padding=1)                            # (nc,    N, 28, 28)
    return jnp.transpose(x, (1, 0, 2, 3))                         # -> NCHW, f32


def prepare_params(params):
    # One-time preprocessing (hoisted out of the forward pass): spatial flip +
    # transpose + reshape of ConvTranspose2d weights to (Cout, kh*kw*Cin), bf16.
    def wmat(w_ct):
        cin, cout, kh, kw = w_ct.shape
        w = jnp.transpose(w_ct[:, :, ::-1, ::-1], (1, 2, 3, 0))   # (Cout,kH,kW,Cin)
        return w.reshape(cout, kh * kw * cin).astype(_MM_DTYPE)

    prep = {'w%d' % i: wmat(params['w%d' % i]) for i in (1, 2, 3, 4)}
    for i in (1, 2, 3):
        prep['g%d' % i] = params['g%d' % i].astype(jnp.float32)
        prep['b%d' % i] = params['b%d' % i].astype(jnp.float32)
    return prep


# ---------------------------------------------------------------------------
# Pure-JAX f32 reference (same math via lax convs) for self-check
# ---------------------------------------------------------------------------
def _ref_forward(x_nchw, params):
    def ct(x, w, s, p):
        cin, cout, kh, kw = w.shape
        wc = jnp.transpose(w[:, :, ::-1, ::-1], (1, 0, 2, 3))     # OIHW
        return lax.conv_general_dilated(
            x, wc, window_strides=(1, 1),
            padding=((kh - 1 - p, kh - 1 - p), (kw - 1 - p, kw - 1 - p)),
            lhs_dilation=(s, s),
            dimension_numbers=('NCHW', 'OIHW', 'NCHW'))

    def bnr(x, g, b):
        mean = x.mean(axis=(0, 2, 3), keepdims=True)
        var = jnp.square(x - mean).mean(axis=(0, 2, 3), keepdims=True)
        y = (x - mean) / jnp.sqrt(var + _BN_EPS)
        y = y * g.reshape(1, -1, 1, 1) + b.reshape(1, -1, 1, 1)
        return jnp.maximum(y, 0.0)

    x = bnr(ct(x_nchw, params['w1'], 1, 0), params['g1'], params['b1'])
    x = bnr(ct(x, params['w2'], 2, 1), params['g2'], params['b2'])
    x = bnr(ct(x, params['w3'], 2, 1), params['g3'], params['b3'])
    return jnp.tanh(ct(x, params['w4'], 2, 1))


# ---------------------------------------------------------------------------
# Deterministic parameter init (DCGAN-style: conv ~ N(0,.02), BN gamma ~ N(1,.02))
# ---------------------------------------------------------------------------
def init_params(key, nz, ngf, nc):
    ks = jax.random.split(key, 7)

    def w(k, cin, cout, kh, kw):
        return 0.02 * jax.random.normal(k, (cin, cout, kh, kw), jnp.float32)

    return {
        'w1': w(ks[0], nz, ngf * 4, 4, 4),
        'g1': 1.0 + 0.02 * jax.random.normal(ks[1], (ngf * 4,), jnp.float32),
        'b1': jnp.zeros((ngf * 4,), jnp.float32),
        'w2': w(ks[2], ngf * 4, ngf * 2, 3, 3),
        'g2': 1.0 + 0.02 * jax.random.normal(ks[3], (ngf * 2,), jnp.float32),
        'b2': jnp.zeros((ngf * 2,), jnp.float32),
        'w3': w(ks[4], ngf * 2, ngf, 4, 4),
        'g3': 1.0 + 0.02 * jax.random.normal(ks[5], (ngf,), jnp.float32),
        'b3': jnp.zeros((ngf,), jnp.float32),
        'w4': w(ks[6], ngf, nc, 4, 4),
    }


if __name__ == "__main__":
    nz, ngf, nc, batch = 10, 8, 1, 2
    key = jax.random.PRNGKey(0)
    k_param, k_z = jax.random.split(key)

    params = init_params(k_param, nz, ngf, nc)
    prep = prepare_params(params)
    z = jax.random.normal(k_z, (batch, nz, 1, 1), jnp.float32)

    fwd = jax.jit(generator_forward)
    out = jax.block_until_ready(fwd(z, prep))
    assert out.shape == (batch, nc, 28, 28), out.shape

    ref = _ref_forward(z, params)
    max_err = float(jnp.max(jnp.abs(out - ref)))
    # bf16 MXU inputs (f32 accumulation) -> loosened tolerance vs f32 reference.
    assert max_err < 5e-2, max_err

    print("KERNEL_OK")
</pallas_src>

<mosaic_0001>
module attributes {stable_mosaic.version = 11 : i64} {
  func.func @_conv_bnstats_kernel(%arg0: i32, %arg1: memref<160x128xbf16, #tpu.memory_space<vmem>>, %arg2: memref<32x160xbf16, #tpu.memory_space<vmem>>, %arg3: memref<32x128xbf16, #tpu.memory_space<vmem>>, %arg4: memref<32x2xf32, #tpu.memory_space<vmem>>) attributes {dimension_semantics = [#tpu.dimension_semantics<parallel>], iteration_bounds = array<i64: 1>, scalar_prefetch = 0 : i64, scratch_operands = 0 : i64, tpu.core_type = #tpu.core_type<tc>, window_params = [{transform_indices = @transform_0, window_bounds = array<i64: 160, 128>}, {pipeline_mode = #tpu.pipeline_mode<synchronous>, transform_indices = @transform_1, window_bounds = array<i64: 32, 160>}, {transform_indices = @transform_2, window_bounds = array<i64: 32, 128>}, {transform_indices = @transform_3, window_bounds = array<i64: 32, 2>}]} {
    %c0 = arith.constant 0 : index
    %c0_0 = arith.constant 0 : index
    %0 = vector.load %arg2[%c0, %c0_0] : memref<32x160xbf16, #tpu.memory_space<vmem>>, vector<32x160xbf16>
    %c0_1 = arith.constant 0 : index
    %c0_2 = arith.constant 0 : index
    %1 = vector.load %arg1[%c0_1, %c0_2] : memref<160x128xbf16, #tpu.memory_space<vmem>>, vector<160x128xbf16>
    %cst = arith.constant dense<0.000000e+00> : vector<32x128xf32>
    %2 = tpu.matmul %0, %1, %cst {dimension_numbers = #tpu.dot_dimension_numbers<[1], [0], [0], [1], [0, 0, 1, 1], [], []>} : vector<32x160xbf16>, vector<160x128xbf16>, vector<32x128xf32> -> vector<32x128xf32>
    %3 = arith.truncf %2 : vector<32x128xf32> to vector<32x128xbf16>
    %c0_3 = arith.constant 0 : index
    %c0_4 = arith.constant 0 : index
    %4 = vector.load %arg3[%c0_3, %c0_4] : memref<32x128xbf16, #tpu.memory_space<vmem>>, vector<32x128xbf16>
    tpu.vector_store %arg3[%c0_3, %c0_4], %3 {strides = array<i32>} : memref<32x128xbf16, #tpu.memory_space<vmem>>, vector<32x128xbf16>,
    %cst_5 = arith.constant dense<0.000000e+00> : vector<32xf32>
    %5 = vector.multi_reduction <add>, %2, %cst_5 [1] : vector<32x128xf32> to vector<32xf32>
    %6 = vector.shape_cast %5 : vector<32xf32> to vector<32x1xf32>
    %7 = arith.mulf %2, %2 : vector<32x128xf32>
    %cst_6 = arith.constant dense<0.000000e+00> : vector<32xf32>
    %8 = vector.multi_reduction <add>, %7, %cst_6 [1] : vector<32x128xf32> to vector<32xf32>
    %9 = vector.shape_cast %8 : vector<32xf32> to vector<32x1xf32>
    %10 = tpu.concatenate %6, %9 in 1 : vector<32x1xf32>, vector<32x1xf32> -> vector<32x2xf32>
    %c0_7 = arith.constant 0 : index
    %c0_8 = arith.constant 0 : index
    %11 = vector.load %arg4[%c0_7, %c0_8] : memref<32x2xf32, #tpu.memory_space<vmem>>, vector<32x2xf32>
    tpu.vector_store %arg4[%c0_7, %c0_8], %10 {strides = array<i32>} : memref<32x2xf32, #tpu.memory_space<vmem>>, vector<32x2xf32>,
    return
  }
  func.func @transform_0(%arg0: i32) -> (i32, i32) {
    %c0_i32 = arith.constant 0 : i32
    %c0_i32_0 = arith.constant 0 : i32
    return %c0_i32, %arg0 : i32, i32
  }
  func.func @transform_1(%arg0: i32) -> (i32, i32) {
    %c0_i32 = arith.constant 0 : i32
    %c0_i32_0 = arith.constant 0 : i32
    %c0_i32_1 = arith.constant 0 : i32
    return %c0_i32, %c0_i32_0 : i32, i32
  }
  func.func @transform_2(%arg0: i32) -> (i32, i32) {
    %c0_i32 = arith.constant 0 : i32
    %c0_i32_0 = arith.constant 0 : i32
    return %c0_i32, %arg0 : i32, i32
  }
  func.func @transform_3(%arg0: i32) -> (i32, i32) {
    %c0_i32 = arith.constant 0 : i32
    %c0_i32_0 = arith.constant 0 : i32
    return %arg0, %c0_i32 : i32, i32
  }
}

module attributes {stable_mosaic.version = 11 : i64} {
  func.func @_scale_shift_relu_kernel(%arg0: i32, %arg1: memref<32x128xbf16, #tpu.memory_space<vmem>>, %arg2: memref<32x1xf32, #tpu.memory_space<vmem>>, %arg3: memref<32x1xf32, #tpu.memory_space<vmem>>, %arg4: memref<32x128xbf16, #tpu.memory_space<vmem>>) attributes {dimension_semantics = [#tpu.dimension_semantics<parallel>], iteration_bounds = array<i64: 1>, scalar_prefetch = 0 : i64, scratch_operands = 0 : i64, tpu.core_type = #tpu.core_type<tc>, window_params = [{transform_indices = @transform_0, window_bounds = array<i64: 32, 128>}, {pipeline_mode = #tpu.pipeline_mode<synchronous>, transform_indices = @transform_1, window_bounds = array<i64: 32, 1>}, {pipeline_mode = #tpu.pipeline_mode<synchronous>, transform_indices = @transform_2, window_bounds = array<i64: 32, 1>}, {transform_indices = @transform_3, window_bounds = array<i64: 32, 128>}]} {
    %c0 = arith.constant 0 : index
    %c0_0 = arith.constant 0 : index
    %0 = vector.load %arg1[%c0, %c0_0] : memref<32x128xbf16, #tpu.memory_space<vmem>>, vector<32x128xbf16>
    %1 = arith.extf %0 : vector<32x128xbf16> to vector<32x128xf32>
    %c0_1 = arith.constant 0 : index
    %c0_2 = arith.constant 0 : index
    %2 = vector.load %arg2[%c0_1, %c0_2] : memref<32x1xf32, #tpu.memory_space<vmem>>, vector<32x1xf32>
    %3 = vector.broadcast %2 : vector<32x1xf32> to vector<32x128xf32>
    %4 = arith.mulf %1, %3 : vector<32x128xf32>
    %c0_3 = arith.constant 0 : index
    %c0_4 = arith.constant 0 : index
    %5 = vector.load %arg3[%c0_3, %c0_4] : memref<32x1xf32, #tpu.memory_space<vmem>>, vector<32x1xf32>
    %6 = vector.broadcast %5 : vector<32x1xf32> to vector<32x128xf32>
    %7 = arith.addf %4, %6 : vector<32x128xf32>
    %cst = arith.constant 0.000000e+00 : f32
    %8 = vector.broadcast %cst : f32 to vector<32x128xf32>
    %9 = arith.maximumf %7, %8 : vector<32x128xf32>
    %10 = arith.truncf %9 : vector<32x128xf32> to vector<32x128xbf16>
    %c0_5 = arith.constant 0 : index
    %c0_6 = arith.constant 0 : index
    %11 = vector.load %arg4[%c0_5, %c0_6] : memref<32x128xbf16, #tpu.memory_space<vmem>>, vector<32x128xbf16>
    tpu.vector_store %arg4[%c0_5, %c0_6], %10 {strides = array<i32>} : memref<32x128xbf16, #tpu.memory_space<vmem>>, vector<32x128xbf16>,
    return
  }
  func.func @transform_0(%arg0: i32) -> (i32, i32) {
    %c0_i32 = arith.constant 0 : i32
    %c0_i32_0 = arith.constant 0 : i32
    return %c0_i32, %arg0 : i32, i32
  }
  func.func @transform_1(%arg0: i32) -> (i32, i32) {
    %c0_i32 = arith.constant 0 : i32
    %c0_i32_0 = arith.constant 0 : i32
    %c0_i32_1 = arith.constant 0 : i32
    return %c0_i32, %c0_i32_0 : i32, i32
  }
  func.func @transform_2(%arg0: i32) -> (i32, i32) {
    %c0_i32 = arith.constant 0 : i32
    %c0_i32_0 = arith.constant 0 : i32
    %c0_i32_1 = arith.constant 0 : i32
    return %c0_i32, %c0_i32_0 : i32, i32
  }
  func.func @transform_3(%arg0: i32) -> (i32, i32) {
    %c0_i32 = arith.constant 0 : i32
    %c0_i32_0 = arith.constant 0 : i32
    return %c0_i32, %arg0 : i32, i32
  }
}

module attributes {stable_mosaic.version = 11 : i64} {
  func.func @_conv_bnstats_kernel(%arg0: i32, %arg1: memref<288x128xbf16, #tpu.memory_space<vmem>>, %arg2: memref<16x288xbf16, #tpu.memory_space<vmem>>, %arg3: memref<16x128xbf16, #tpu.memory_space<vmem>>, %arg4: memref<16x2xf32, #tpu.memory_space<vmem>>) attributes {dimension_semantics = [#tpu.dimension_semantics<parallel>], iteration_bounds = array<i64: 1>, scalar_prefetch = 0 : i64, scratch_operands = 0 : i64, tpu.core_type = #tpu.core_type<tc>, window_params = [{transform_indices = @transform_0, window_bounds = array<i64: 288, 128>}, {pipeline_mode = #tpu.pipeline_mode<synchronous>, transform_indices = @transform_1, window_bounds = array<i64: 16, 288>}, {transform_indices = @transform_2, window_bounds = array<i64: 16, 128>}, {transform_indices = @transform_3, window_bounds = array<i64: 16, 2>}]} {
    %c0 = arith.constant 0 : index
    %c0_0 = arith.constant 0 : index
    %0 = vector.load %arg2[%c0, %c0_0] : memref<16x288xbf16, #tpu.memory_space<vmem>>, vector<16x288xbf16>
    %c0_1 = arith.constant 0 : index
    %c0_2 = arith.constant 0 : index
    %1 = vector.load %arg1[%c0_1, %c0_2] : memref<288x128xbf16, #tpu.memory_space<vmem>>, vector<288x128xbf16>
    %cst = arith.constant dense<0.000000e+00> : vector<16x128xf32>
    %2 = tpu.matmul %0, %1, %cst {dimension_numbers = #tpu.dot_dimension_numbers<[1], [0], [0], [1], [0, 0, 1, 1], [], []>} : vector<16x288xbf16>, vector<288x128xbf16>, vector<16x128xf32> -> vector<16x128xf32>
    %3 = arith.truncf %2 : vector<16x128xf32> to vector<16x128xbf16>
    %c0_3 = arith.constant 0 : index
    %c0_4 = arith.constant 0 : index
    %4 = vector.load %arg3[%c0_3, %c0_4] : memref<16x128xbf16, #tpu.memory_space<vmem>>, vector<16x128xbf16>
    tpu.vector_store %arg3[%c0_3, %c0_4], %3 {strides = array<i32>} : memref<16x128xbf16, #tpu.memory_space<vmem>>, vector<16x128xbf16>,
    %cst_5 = arith.constant dense<0.000000e+00> : vector<16xf32>
    %5 = vector.multi_reduction <add>, %2, %cst_5 [1] : vector<16x128xf32> to vector<16xf32>
    %6 = vector.shape_cast %5 : vector<16xf32> to vector<16x1xf32>
    %7 = arith.mulf %2, %2 : vector<16x128xf32>
    %cst_6 = arith.constant dense<0.000000e+00> : vector<16xf32>
    %8 = vector.multi_reduction <add>, %7, %cst_6 [1] : vector<16x128xf32> to vector<16xf32>
    %9 = vector.shape_cast %8 : vector<16xf32> to vector<16x1xf32>
    %10 = tpu.concatenate %6, %9 in 1 : vector<16x1xf32>, vector<16x1xf32> -> vector<16x2xf32>
    %c0_7 = arith.constant 0 : index
    %c0_8 = arith.constant 0 : index
    %11 = vector.load %arg4[%c0_7, %c0_8] : memref<16x2xf32, #tpu.memory_space<vmem>>, vector<16x2xf32>
    tpu.vector_store %arg4[%c0_7, %c0_8], %10 {strides = array<i32>} : memref<16x2xf32, #tpu.memory_space<vmem>>, vector<16x2xf32>,
    return
  }
  func.func @transform_0(%arg0: i32) -> (i32, i32) {
    %c0_i32 = arith.constant 0 : i32
    %c0_i32_0 = arith.constant 0 : i32
    return %c0_i32, %arg0 : i32, i32
  }
  func.func @transform_1(%arg0: i32) -> (i32, i32) {
    %c0_i32 = arith.constant 0 : i32
    %c0_i32_0 = arith.constant 0 : i32
    %c0_i32_1 = arith.constant 0 : i32
    return %c0_i32, %c0_i32_0 : i32, i32
  }
  func.func @transform_2(%arg0: i32) -> (i32, i32) {
    %c0_i32 = arith.constant 0 : i32
    %c0_i32_0 = arith.constant 0 : i32
    return %c0_i32, %arg0 : i32, i32
  }
  func.func @transform_3(%arg0: i32) -> (i32, i32) {
    %c0_i32 = arith.constant 0 : i32
    %c0_i32_0 = arith.constant 0 : i32
    return %arg0, %c0_i32 : i32, i32
  }
}

module attributes {stable_mosaic.version = 11 : i64} {
  func.func @_scale_shift_relu_kernel(%arg0: i32, %arg1: memref<16x128xbf16, #tpu.memory_space<vmem>>, %arg2: memref<16x1xf32, #tpu.memory_space<vmem>>, %arg3: memref<16x1xf32, #tpu.memory_space<vmem>>, %arg4: memref<16x128xbf16, #tpu.memory_space<vmem>>) attributes {dimension_semantics = [#tpu.dimension_semantics<parallel>], iteration_bounds = array<i64: 1>, scalar_prefetch = 0 : i64, scratch_operands = 0 : i64, tpu.core_type = #tpu.core_type<tc>, window_params = [{transform_indices = @transform_0, window_bounds = array<i64: 16, 128>}, {pipeline_mode = #tpu.pipeline_mode<synchronous>, transform_indices = @transform_1, window_bounds = array<i64: 16, 1>}, {pipeline_mode = #tpu.pipeline_mode<synchronous>, transform_indices = @transform_2, window_bounds = array<i64: 16, 1>}, {transform_indices = @transform_3, window_bounds = array<i64: 16, 128>}]} {
    %c0 = arith.constant 0 : index
    %c0_0 = arith.constant 0 : index
    %0 = vector.load %arg1[%c0, %c0_0] : memref<16x128xbf16, #tpu.memory_space<vmem>>, vector<16x128xbf16>
    %1 = arith.extf %0 : vector<16x128xbf16> to vector<16x128xf32>
    %c0_1 = arith.constant 0 : index
    %c0_2 = arith.constant 0 : index
    %2 = vector.load %arg2[%c0_1, %c0_2] : memref<16x1xf32, #tpu.memory_space<vmem>>, vector<16x1xf32>
    %3 = vector.broadcast %2 : vector<16x1xf32> to vector<16x128xf32>
    %4 = arith.mulf %1, %3 : vector<16x128xf32>
    %c0_3 = arith.constant 0 : index
    %c0_4 = arith.constant 0 : index
    %5 = vector.load %arg3[%c0_3, %c0_4] : memref<16x1xf32, #tpu.memory_space<vmem>>, vector<16x1xf32>
    %6 = vector.broadcast %5 : vector<16x1xf32> to vector<16x128xf32>
    %7 = arith.addf %4, %6 : vector<16x128xf32>
    %cst = arith.constant 0.000000e+00 : f32
    %8 = vector.broadcast %cst : f32 to vector<16x128xf32>
    %9 = arith.maximumf %7, %8 : vector<16x128xf32>
    %10 = arith.truncf %9 : vector<16x128xf32> to vector<16x128xbf16>
    %c0_5 = arith.constant 0 : index
    %c0_6 = arith.constant 0 : index
    %11 = vector.load %arg4[%c0_5, %c0_6] : memref<16x128xbf16, #tpu.memory_space<vmem>>, vector<16x128xbf16>
    tpu.vector_store %arg4[%c0_5, %c0_6], %10 {strides = array<i32>} : memref<16x128xbf16, #tpu.memory_space<vmem>>, vector<16x128xbf16>,
    return
  }
  func.func @transform_0(%arg0: i32) -> (i32, i32) {
    %c0_i32 = arith.constant 0 : i32
    %c0_i32_0 = arith.constant 0 : i32
    return %c0_i32, %arg0 : i32, i32
  }
  func.func @transform_1(%arg0: i32) -> (i32, i32) {
    %c0_i32 = arith.constant 0 : i32
    %c0_i32_0 = arith.constant 0 : i32
    %c0_i32_1 = arith.constant 0 : i32
    return %c0_i32, %c0_i32_0 : i32, i32
  }
  func.func @transform_2(%arg0: i32) -> (i32, i32) {
    %c0_i32 = arith.constant 0 : i32
    %c0_i32_0 = arith.constant 0 : i32
    %c0_i32_1 = arith.constant 0 : i32
    return %c0_i32, %c0_i32_0 : i32, i32
  }
  func.func @transform_3(%arg0: i32) -> (i32, i32) {
    %c0_i32 = arith.constant 0 : i32
    %c0_i32_0 = arith.constant 0 : i32
    return %c0_i32, %arg0 : i32, i32
  }
}

module attributes {stable_mosaic.version = 11 : i64} {
  func.func @_conv_bnstats_kernel(%arg0: i32, %arg1: memref<256x512xbf16, #tpu.memory_space<vmem>>, %arg2: memref<8x256xbf16, #tpu.memory_space<vmem>>, %arg3: memref<8x512xbf16, #tpu.memory_space<vmem>>, %arg4: memref<8x2xf32, #tpu.memory_space<vmem>>) attributes {dimension_semantics = [#tpu.dimension_semantics<parallel>], iteration_bounds = array<i64: 1>, scalar_prefetch = 0 : i64, scratch_operands = 0 : i64, tpu.core_type = #tpu.core_type<tc>, window_params = [{transform_indices = @transform_0, window_bounds = array<i64: 256, 512>}, {pipeline_mode = #tpu.pipeline_mode<synchronous>, transform_indices = @transform_1, window_bounds = array<i64: 8, 256>}, {transform_indices = @transform_2, window_bounds = array<i64: 8, 512>}, {transform_indices = @transform_3, window_bounds = array<i64: 8, 2>}]} {
    %c0 = arith.constant 0 : index
    %c0_0 = arith.constant 0 : index
    %0 = vector.load %arg2[%c0, %c0_0] : memref<8x256xbf16, #tpu.memory_space<vmem>>, vector<8x256xbf16>
    %c0_1 = arith.constant 0 : index
    %c0_2 = arith.constant 0 : index
    %1 = vector.load %arg1[%c0_1, %c0_2] : memref<256x512xbf16, #tpu.memory_space<vmem>>, vector<256x512xbf16>
    %cst = arith.constant dense<0.000000e+00> : vector<8x512xf32>
    %2 = tpu.matmul %0, %1, %cst {dimension_numbers = #tpu.dot_dimension_numbers<[1], [0], [0], [1], [0, 0, 1, 1], [], []>} : vector<8x256xbf16>, vector<256x512xbf16>, vector<8x512xf32> -> vector<8x512xf32>
    %3 = arith.truncf %2 : vector<8x512xf32> to vector<8x512xbf16>
    %c0_3 = arith.constant 0 : index
    %c0_4 = arith.constant 0 : index
    %4 = vector.load %arg3[%c0_3, %c0_4] : memref<8x512xbf16, #tpu.memory_space<vmem>>, vector<8x512xbf16>
    tpu.vector_store %arg3[%c0_3, %c0_4], %3 {strides = array<i32>} : memref<8x512xbf16, #tpu.memory_space<vmem>>, vector<8x512xbf16>,
    %cst_5 = arith.constant dense<0.000000e+00> : vector<8xf32>
    %5 = vector.multi_reduction <add>, %2, %cst_5 [1] : vector<8x512xf32> to vector<8xf32>
    %6 = vector.shape_cast %5 : vector<8xf32> to vector<8x1xf32>
    %7 = arith.mulf %2, %2 : vector<8x512xf32>
    %cst_6 = arith.constant dense<0.000000e+00> : vector<8xf32>
    %8 = vector.multi_reduction <add>, %7, %cst_6 [1] : vector<8x512xf32> to vector<8xf32>
    %9 = vector.shape_cast %8 : vector<8xf32> to vector<8x1xf32>
    %10 = tpu.concatenate %6, %9 in 1 : vector<8x1xf32>, vector<8x1xf32> -> vector<8x2xf32>
    %c0_7 = arith.constant 0 : index
    %c0_8 = arith.constant 0 : index
    %11 = vector.load %arg4[%c0_7, %c0_8] : memref<8x2xf32, #tpu.memory_space<vmem>>, vector<8x2xf32>
    tpu.vector_store %arg4[%c0_7, %c0_8], %10 {strides = array<i32>} : memref<8x2xf32, #tpu.memory_space<vmem>>, vector<8x2xf32>,
    return
  }
  func.func @transform_0(%arg0: i32) -> (i32, i32) {
    %c0_i32 = arith.constant 0 : i32
    %c0_i32_0 = arith.constant 0 : i32
    return %c0_i32, %arg0 : i32, i32
  }
  func.func @transform_1(%arg0: i32) -> (i32, i32) {
    %c0_i32 = arith.constant 0 : i32
    %c0_i32_0 = arith.constant 0 : i32
    %c0_i32_1 = arith.constant 0 : i32
    return %c0_i32, %c0_i32_0 : i32, i32
  }
  func.func @transform_2(%arg0: i32) -> (i32, i32) {
    %c0_i32 = arith.constant 0 : i32
    %c0_i32_0 = arith.constant 0 : i32
    return %c0_i32, %arg0 : i32, i32
  }
  func.func @transform_3(%arg0: i32) -> (i32, i32) {
    %c0_i32 = arith.constant 0 : i32
    %c0_i32_0 = arith.constant 0 : i32
    return %arg0, %c0_i32 : i32, i32
  }
}

module attributes {stable_mosaic.version = 11 : i64} {
  func.func @_scale_shift_relu_kernel(%arg0: i32, %arg1: memref<8x512xbf16, #tpu.memory_space<vmem>>, %arg2: memref<8x1xf32, #tpu.memory_space<vmem>>, %arg3: memref<8x1xf32, #tpu.memory_space<vmem>>, %arg4: memref<8x512xbf16, #tpu.memory_space<vmem>>) attributes {dimension_semantics = [#tpu.dimension_semantics<parallel>], iteration_bounds = array<i64: 1>, scalar_prefetch = 0 : i64, scratch_operands = 0 : i64, tpu.core_type = #tpu.core_type<tc>, window_params = [{transform_indices = @transform_0, window_bounds = array<i64: 8, 512>}, {pipeline_mode = #tpu.pipeline_mode<synchronous>, transform_indices = @transform_1, window_bounds = array<i64: 8, 1>}, {pipeline_mode = #tpu.pipeline_mode<synchronous>, transform_indices = @transform_2, window_bounds = array<i64: 8, 1>}, {transform_indices = @transform_3, window_bounds = array<i64: 8, 512>}]} {
    %c0 = arith.constant 0 : index
    %c0_0 = arith.constant 0 : index
    %0 = vector.load %arg1[%c0, %c0_0] : memref<8x512xbf16, #tpu.memory_space<vmem>>, vector<8x512xbf16>
    %1 = arith.extf %0 : vector<8x512xbf16> to vector<8x512xf32>
    %c0_1 = arith.constant 0 : index
    %c0_2 = arith.constant 0 : index
    %2 = vector.load %arg2[%c0_1, %c0_2] : memref<8x1xf32, #tpu.memory_space<vmem>>, vector<8x1xf32>
    %3 = vector.broadcast %2 : vector<8x1xf32> to vector<8x512xf32>
    %4 = arith.mulf %1, %3 : vector<8x512xf32>
    %c0_3 = arith.constant 0 : index
    %c0_4 = arith.constant 0 : index
    %5 = vector.load %arg3[%c0_3, %c0_4] : memref<8x1xf32, #tpu.memory_space<vmem>>, vector<8x1xf32>
    %6 = vector.broadcast %5 : vector<8x1xf32> to vector<8x512xf32>
    %7 = arith.addf %4, %6 : vector<8x512xf32>
    %cst = arith.constant 0.000000e+00 : f32
    %8 = vector.broadcast %cst : f32 to vector<8x512xf32>
    %9 = arith.maximumf %7, %8 : vector<8x512xf32>
    %10 = arith.truncf %9 : vector<8x512xf32> to vector<8x512xbf16>
    %c0_5 = arith.constant 0 : index
    %c0_6 = arith.constant 0 : index
    %11 = vector.load %arg4[%c0_5, %c0_6] : memref<8x512xbf16, #tpu.memory_space<vmem>>, vector<8x512xbf16>
    tpu.vector_store %arg4[%c0_5, %c0_6], %10 {strides = array<i32>} : memref<8x512xbf16, #tpu.memory_space<vmem>>, vector<8x512xbf16>,
    return
  }
  func.func @transform_0(%arg0: i32) -> (i32, i32) {
    %c0_i32 = arith.constant 0 : i32
    %c0_i32_0 = arith.constant 0 : i32
    return %c0_i32, %arg0 : i32, i32
  }
  func.func @transform_1(%arg0: i32) -> (i32, i32) {
    %c0_i32 = arith.constant 0 : i32
    %c0_i32_0 = arith.constant 0 : i32
    %c0_i32_1 = arith.constant 0 : i32
    return %c0_i32, %c0_i32_0 : i32, i32
  }
  func.func @transform_2(%arg0: i32) -> (i32, i32) {
    %c0_i32 = arith.constant 0 : i32
    %c0_i32_0 = arith.constant 0 : i32
    %c0_i32_1 = arith.constant 0 : i32
    return %c0_i32, %c0_i32_0 : i32, i32
  }
  func.func @transform_3(%arg0: i32) -> (i32, i32) {
    %c0_i32 = arith.constant 0 : i32
    %c0_i32_0 = arith.constant 0 : i32
    return %c0_i32, %arg0 : i32, i32
  }
}

module attributes {stable_mosaic.version = 11 : i64} {
  func.func @_conv_tanh_kernel(%arg0: i32, %arg1: memref<128x512xbf16, #tpu.memory_space<vmem>>, %arg2: memref<8x128xbf16, #tpu.memory_space<vmem>>, %arg3: memref<8x512xf32, #tpu.memory_space<vmem>>) attributes {dimension_semantics = [#tpu.dimension_semantics<parallel>], iteration_bounds = array<i64: 4>, scalar_prefetch = 0 : i64, scratch_operands = 0 : i64, tpu.core_type = #tpu.core_type<tc>, window_params = [{transform_indices = @transform_0, window_bounds = array<i64: 128, 512>}, {pipeline_mode = #tpu.pipeline_mode<synchronous>, transform_indices = @transform_1, window_bounds = array<i64: 8, 128>}, {transform_indices = @transform_2, window_bounds = array<i64: 8, 512>}]} {
    %c0 = arith.constant 0 : index
    %c0_0 = arith.constant 0 : index
    %0 = vector.load %arg2[%c0, %c0_0] : memref<8x128xbf16, #tpu.memory_space<vmem>>, vector<8x128xbf16>
    %c0_1 = arith.constant 0 : index
    %c0_2 = arith.constant 0 : index
    %1 = vector.load %arg1[%c0_1, %c0_2] : memref<128x512xbf16, #tpu.memory_space<vmem>>, vector<128x512xbf16>
    %cst = arith.constant dense<0.000000e+00> : vector<8x512xf32>
    %2 = tpu.matmul %0, %1, %cst {dimension_numbers = #tpu.dot_dimension_numbers<[1], [0], [0], [1], [0, 0, 1, 1], [], []>} : vector<8x128xbf16>, vector<128x512xbf16>, vector<8x512xf32> -> vector<8x512xf32>
    %3 = math.tanh %2 : vector<8x512xf32>
    %c0_3 = arith.constant 0 : index
    %c0_4 = arith.constant 0 : index
    %4 = vector.load %arg3[%c0_3, %c0_4] : memref<8x512xf32, #tpu.memory_space<vmem>>, vector<8x512xf32>
    tpu.vector_store %arg3[%c0_3, %c0_4], %3 {strides = array<i32>} : memref<8x512xf32, #tpu.memory_space<vmem>>, vector<8x512xf32>,
    return
  }
  func.func @transform_0(%arg0: i32) -> (i32, i32) {
    %c0_i32 = arith.constant 0 : i32
    %c0_i32_0 = arith.constant 0 : i32
    return %c0_i32, %arg0 : i32, i32
  }
  func.func @transform_1(%arg0: i32) -> (i32, i32) {
    %c0_i32 = arith.constant 0 : i32
    %c0_i32_0 = arith.constant 0 : i32
    %c0_i32_1 = arith.constant 0 : i32
    return %c0_i32, %c0_i32_0 : i32, i32
  }
  func.func @transform_2(%arg0: i32) -> (i32, i32) {
    %c0_i32 = arith.constant 0 : i32
    %c0_i32_0 = arith.constant 0 : i32
    return %c0_i32, %arg0 : i32, i32
  }
}

</mosaic_0001>

<bundles_post_ra>
// kernel: generator_forward.8
= control target key start
LH: loop header
LB: loop body
LE: loop exit
PB: predicated region body
PF: predicated region fallthrough
CT: control target
= control target key end

     0   :  { %v137_v0 = vmov 0   ;;  %s194_s1 = inlined_call_operand.vmem [shape: f32[32,1], index: 1, kind: input, shape index: {}]   ;;  %s195_s2 = inlined_call_operand.vmem [shape: f32[32,1], index: 2, kind: input, shape index: {}]   ;;  %s196_s0 = inlined_call_operand.vmem [shape: bf16[32,128], index: 0, kind: input, shape index: {}]   ;;  %s197_s3 = inlined_call_operand.vmem [shape: bf16[32,128], index: 3, kind: output, shape index: {}]  }
   0x1   :  { %136 = vset.pattern.permute.xlu1 %v137_v0  ;;  %135 = vset.pattern.permute.xlu0 %v137_v0  ;;  %v24_v1 = vld [vmem:[%s194_s1 + $0x10] sm:$0xff]  ;;  %v22_v2 = vld [vmem:[%s194_s1] sm:$0xff]  ;;  %v25_v3 = vld [vmem:[%s194_s1 + $0x18] sm:$0xff] }
   0x2   :  { %38 = vperm.xlu1 %136, %v24_v1   ;;  %28 = vperm.xlu0 %135, %v22_v2   ;;  %v23_v4 = vld [vmem:[%s194_s1 + $0x8] sm:$0xff]  ;;  %v50_v6 = vld [vmem:[%s195_s2] sm:$0xff]  ;;  %v53_v7 = vld [vmem:[%s195_s2 + $0x18] sm:$0xff] }
   0x3   :  { %v51_v5 = vld [vmem:[%s195_s2 + $0x8] sm:$0xff]  ;;  %v52_v8 = vld [vmem:[%s195_s2 + $0x10] sm:$0xff]  ;;  %v115_v11 = vld [vmem:[%s196_s0] sm:$0xff]  }
   0x4   :  { %v116_v12 = vunpack.c.l.bf16 %v115_v11  ;;  %v117_v13 = vunpack.c.h.bf16 %v115_v11  ;;  %v132_v14 = vld [vmem:[%s196_s0 + $0x8] sm:$0xff]  }
   0x5   :  { %v120_v17 = vunpack.c.l.bf16 %v132_v14  ;;  %v121_v19 = vunpack.c.h.bf16 %v132_v14 }
   0x6   :  { %43 = vperm.xlu1 %136, %v25_v3   ;;  %33 = vperm.xlu0 %135, %v23_v4  }
   0xa   :  { %61 = vperm.xlu1 %136, %v51_v5   ;;  %56 = vperm.xlu0 %135, %v50_v6  }
   0xe   :  { %71 = vperm.xlu1 %136, %v53_v7   ;;  %66 = vperm.xlu0 %135, %v52_v8  }
  0x7d   :  { %v39_v9 = vpop.permute.xlu1 %38  ;;  %v29_v10 = vpop.permute.xlu0 %28 }
  0x7e   :  { %v46_v18 = vmul.f32 %v116_v12, %v29_v10  ;;  %v48_v25 = vmul.f32 %v120_v17, %v39_v9 }
  0x81   :  { %v44_v15 = vpop.permute.xlu1 %43  ;;  %v34_v16 = vpop.permute.xlu0 %33 }
  0x82   :  { %v47_v20 = vmul.f32 %v117_v13, %v34_v16  ;;  %v49_v26 = vmul.f32 %v121_v19, %v44_v15 }
  0x85   :  { %v62_v21 = vpop.permute.xlu1 %61  ;;  %v57_v22 = vpop.permute.xlu0 %56 }
  0x86   :  { %v75_v23 = vadd.f32 %v62_v21, %v47_v20  ;;  %v74_v24 = vadd.f32 %v57_v22, %v46_v18 }
  0x88   :  { %v79_v27 = vmax.f32 %v75_v23, 0.0  ;;  %v78_v28 = vmax.f32 %v74_v24, 0.0 }
  0x89   :  { %v72_v29 = vpop.permute.xlu1 %71  ;;  %v67_v30 = vpop.permute.xlu0 %66 }
  0x8a   :  { %v125_v31 = vpack.c.bf16 %v79_v27, %v78_v28  ;;  %v77_v32 = vadd.f32 %v72_v29, %v49_v26  ;;  %v76_v33 = vadd.f32 %v67_v30, %v48_v25 }
  0x8c   :  { %126 = vst [vmem:[%s197_s3] sm:$0xff] %v125_v31   ;;  %v81_v34 = vmax.f32 %v77_v32, 0.0  ;;  %v80_v35 = vmax.f32 %v76_v33, 0.0 }
  0x8e   :  { %v130_v36 = vpack.c.bf16 %v81_v34, %v80_v35 }
  0x90   :  { %133 = vst [vmem:[%s197_s3 + $0x8] sm:$0xff] %v130_v36  }

// kernel: generator_forward.7
= control target key start
LH: loop header
LB: loop body
LE: loop exit
PB: predicated region body
PF: predicated region fallthrough
CT: control target
= control target key end

     0   :  { %9 = vsyncpa [#allocation3], 0  ;;  %s342_s12 = smov [#allocation2]   ;;  %s417_s0 = inlined_call_operand.vmem [shape: bf16[160,128], index: 0, kind: input, shape index: {}]   ;;  %s418_s1 = inlined_call_operand.hbm [shape: bf16[32,160], index: 1, kind: input, shape index: {}]   ;;  %s419_s2 = inlined_call_operand.vmem [shape: bf16[32,128], index: 2, kind: output, shape index: {0}]   ;;  %s420_s3 = inlined_call_operand.vmem [shape: f32[32,2], index: 3, kind: output, shape index: {1}]  }
   0x1   :  { %s17_s13 = sshll.u32 %s342_s12, 4  ;;  %s18_s13 = int_to_ptr.vmem [resolvable:$true] %s17_s13 }
   0x2   :  { %s328_s14 = scalar_lea.vmem %s18_s13, 512  ;;  %p333_p1 = scmp.lt.s32.totalorder %s18_s13, %s18_s13 }
   0x3   :  { %p329_p0 = scmp.ne.s32.totalorder %s18_s13, %s328_s14  ;;  %p334_p2 = scmp.lt.s32.totalorder %s328_s14, %s328_s14 }
   0x5   :  { %p335_p3 = por %p334_p2, %p333_p1 }
   0x7   :  { %p336_p4 = pnand %p335_p3, %p329_p0 }
   0x9   :  { %339 = shalt.err (!%p336_p4)
}
   0xa   :  { %s343_s15 = smov 128   ;;  %s344_s16 = smov 8  }
   0xb   :  { %23 = dma.hbm_to_vmem [thread:$0]  %s418_s1, 512, %s18_s13, [#allocation3], %s343_s15, %s343_s15, %s344_s16  }
   0xc   :  { %340 = dma.done.wait [#allocation3], 512  }
   0xd   :  { %341 = vsyncadd [#allocation3], 4294966784  ;;  %v345_v0 = vmov 0   ;;  %v304_v1 = vld [vmem:[%s417_s0 + $0x38] sm:$0xff]   ;;  %v305_v2 = vld [vmem:[%s417_s0 + $0x30] sm:$0xff]   ;;  %vm130_vm0 = vcmask 261120  }
   0xe   :  { %137 = vmatprep.subr.bf16.mxu0 %v345_v0  ;;  %280 = vmatprep.subr.bf16.mxu1 %v345_v0  ;;  %v306_v3 = vld [vmem:[%s417_s0 + $0x28] sm:$0xff]   ;;  %v307_v4 = vld [vmem:[%s417_s0 + $0x20] sm:$0xff]   ;;  %v319_v6 = vld [vmem:[#allocation2 + $0x14] ss:$8 sps:$4 sm:$0xff]   ;;  %vm226_vm1 = vcmask 7168   ;;  %vm231_vm2 = vcmask 15360  }
   0xf   :  { %138 = vmatpush1.bf16.msra.mxu0 %v304_v1  ;;  %290 = vmatpush1.bf16.msra.mxu1 %v304_v1  ;;  %v316_v5 = vld [vmem:[#allocation2 + $0x4] ss:$8 sps:$4 sm:$0xff]   ;;  %v308_v7 = vld [vmem:[%s417_s0 + $0x18] sm:$0xff]   ;;  %v309_v8 = vld [vmem:[%s417_s0 + $0x10] sm:$0xff]  }
  0x10   :  { %139 = vmatprep.subr.bf16.mxu0 %v345_v0  ;;  %281 = vmatprep.subr.bf16.mxu1 %v345_v0  ;;  %v310_v9 = vld [vmem:[%s417_s0 + $0x8] sm:$0xff]   ;;  %v311_v10 = vld [vmem:[%s417_s0] sm:$0xff]   ;;  %v317_v14 = vld [vmem:[#allocation2 + $0x10] ss:$8 sps:$4 sm:$0xff]  }
  0x11   :  { %259 = vmatprep.mubr.msk.bf16.mxu0 %vm130_vm0, %v316_v5  ;;  %260 = vmatprep.mubr.msk.bf16.mxu1 %vm130_vm0, %v319_v6  ;;  %v312_v11 = vld [vmem:[%s417_s0 + $0x48] sm:$0xff]   ;;  %v313_v12 = vld [vmem:[%s417_s0 + $0x40] sm:$0xff]  }
  0x12   :  { %v314_v13 = vld [vmem:[#allocation2] ss:$8 sps:$4 sm:$0xff]  }
  0x13   :  { %140 = vmatpush1.bf16.msra.mxu0 %v305_v2  ;;  %291 = vmatpush1.bf16.msra.mxu1 %v305_v2 }
  0x14   :  { %141 = vmatprep.subr.bf16.mxu0 %v345_v0  ;;  %282 = vmatprep.subr.bf16.mxu1 %v345_v0 }
  0x17   :  { %142 = vmatpush1.bf16.msra.mxu0 %v306_v3  ;;  %292 = vmatpush1.bf16.msra.mxu1 %v306_v3 }
  0x18   :  { %143 = vmatprep.subr.bf16.mxu0 %v345_v0  ;;  %283 = vmatprep.subr.bf16.mxu1 %v345_v0 }
  0x1b   :  { %144 = vmatpush1.bf16.msra.mxu0 %v307_v4  ;;  %293 = vmatpush1.bf16.msra.mxu1 %v307_v4 }
  0x1c   :  { %145 = vmatprep.subr.bf16.mxu0 %v345_v0  ;;  %284 = vmatprep.subr.bf16.mxu1 %v345_v0 }
  0x1f   :  { %146 = vmatpush1.bf16.msra.mxu0 %v308_v7  ;;  %294 = vmatpush1.bf16.msra.mxu1 %v308_v7 }
  0x20   :  { %147 = vmatprep.subr.bf16.mxu0 %v345_v0  ;;  %285 = vmatprep.subr.bf16.mxu1 %v345_v0 }
  0x23   :  { %148 = vmatpush1.bf16.msra.mxu0 %v309_v8  ;;  %295 = vmatpush1.bf16.msra.mxu1 %v309_v8 }
  0x24   :  { %149 = vmatprep.subr.bf16.mxu0 %v345_v0  ;;  %286 = vmatprep.subr.bf16.mxu1 %v345_v0 }
  0x27   :  { %150 = vmatpush1.bf16.msra.mxu0 %v310_v9  ;;  %296 = vmatpush1.bf16.msra.mxu1 %v310_v9 }
  0x28   :  { %151 = vmatprep.subr.bf16.mxu0 %v345_v0  ;;  %287 = vmatprep.subr.bf16.mxu1 %v345_v0 }
  0x2b   :  { %152 = vmatpush1.bf16.msra.mxu0 %v311_v10  ;;  %297 = vmatpush1.bf16.msra.mxu1 %v311_v10 }
  0x2c   :  { %165 = vmatprep.subr.bf16.mxu0 %v345_v0  ;;  %288 = vmatprep.subr.bf16.mxu1 %v345_v0 }
  0x2f   :  { %166 = vmatpush2.bf16.msra.mxu0 %v312_v11  ;;  %298 = vmatpush2.bf16.msra.mxu1 %v312_v11 }
  0x30   :  { %167 = vmatprep.subr.bf16.mxu0 %v345_v0  ;;  %289 = vmatprep.subr.bf16.mxu1 %v345_v0 }
  0x33   :  { %168 = vmatpush2.bf16.msra.mxu0 %v313_v12  ;;  %299 = vmatpush2.bf16.msra.mxu1 %v313_v12 }
  0x36   :  { %170 = vmatmul.mubr.bf16.vlgmr.msra.gmra.mxu0 %v314_v13  ;;  %178 = vmatmul.mubr.bf16.vlgmr.msra.gmra.mxu1 %v317_v14 }
  0xf6   :  { %v171_v15 = vpop.f32.mrf.mxu0  ;;  %v179_v16 = vpop.f32.mrf.mxu1 }
  0xf7   :  { %210 = vadd.xlane.f32.xlu1 %v179_v16  ;;  %206 = vadd.xlane.f32.xlu0 %v171_v15  ;;  %v214_v19 = vmul.f32 %v171_v15, %v171_v15  ;;  %v216_v27 = vmul.f32 %v179_v16, %v179_v16 }
  0xf8   :  { %v173_v17 = vpop.f32.mrf.mxu0  ;;  %v181_v18 = vpop.f32.mrf.mxu1 }
  0xfa   :  { %v174_v20 = vpop.f32.mrf.mxu0  ;;  %v182_v21 = vpop.f32.mrf.mxu1 }
  0xfb   :  { %v272_v22 = vpack.c.bf16 %v174_v20, %v171_v15  ;;  %v277_v23 = vpack.c.bf16 %v182_v21, %v179_v16  ;;  %212 = vadd.xlane.f32.xlu1 %v182_v21  ;;  %218 = vadd.xlane.f32.xlu0 %v214_v19  ;;  %v215_v26 = vmul.f32 %v174_v20, %v174_v20 }
  0xfc   :  { %v176_v24 = vpop.f32.mrf.mxu0  ;;  %v184_v25 = vpop.f32.mrf.mxu1  ;;  %v217_v28 = vmul.f32 %v182_v21, %v182_v21 }
  0xfd   :  { %273 = vst [vmem:[%s419_s2] sm:$0xff] %v272_v22   ;;  %279 = vst [vmem:[%s419_s2 + $0x8] sm:$0xff] %v277_v23  }
  0xff   :  { %208 = vadd.xlane.f32.xlu0 %v174_v20  ;;  %220 = vadd.xlane.f32.xlu1 %v215_v26 }
 0x103   :  { %222 = vadd.xlane.f32.xlu0 %v216_v27  ;;  %224 = vadd.xlane.f32.xlu1 %v217_v28 }
 0x180   :  { %v211_v29 = vpop.xlane.xlu1 %210  ;;  %v207_v30 = vpop.xlane.xlu0 %206 }
 0x184   :  { %v213_v31 = vpop.xlane.xlu1 %212  ;;  %v219_v32 = vpop.xlane.xlu0 %218 }
 0x185   :  { %v227_v33 = vsel %vm226_vm1, %v207_v30, %v219_v32 }
 0x186   :  { %232 = vst.msk [vmem:[%s420_s3] sm:$0xff] %vm231_vm2, %v227_v33 }
 0x188   :  { %v209_v34 = vpop.xlane.xlu0 %208  ;;  %v221_v35 = vpop.xlane.xlu1 %220 }
 0x189   :  { %v228_v36 = vsel %vm226_vm1, %v209_v34, %v221_v35 }
 0x18a   :  { %233 = vst.msk [vmem:[%s420_s3 + $0x8] sm:$0xff] %vm231_vm2, %v228_v36 }
 0x18c   :  { %v223_v37 = vpop.xlane.xlu0 %222  ;;  %v225_v38 = vpop.xlane.xlu1 %224 }
 0x18d   :  { %v229_v39 = vsel %vm226_vm1, %v211_v29, %v223_v37  ;;  %v230_v40 = vsel %vm226_vm1, %v213_v31, %v225_v38 }
 0x18e   :  { %234 = vst.msk [vmem:[%s420_s3 + $0x10] sm:$0xff] %vm231_vm2, %v229_v39  ;;  %235 = vst.msk [vmem:[%s420_s3 + $0x18] sm:$0xff] %vm231_vm2, %v230_v40 }
 0x18f   :  { %244 = vsyncpa [#allocation3], 1 }

// kernel: generator_forward.10
= control target key start
LH: loop header
LB: loop body
LE: loop exit
PB: predicated region body
PF: predicated region fallthrough
CT: control target
= control target key end

     0   :  { %v78_v0 = vmov 0   ;;  %s117_s2 = inlined_call_operand.vmem [shape: f32[16,1], index: 2, kind: input, shape index: {}]   ;;  %s118_s1 = inlined_call_operand.vmem [shape: f32[16,1], index: 1, kind: input, shape index: {}]   ;;  %s119_s0 = inlined_call_operand.vmem [shape: bf16[16,128], index: 0, kind: input, shape index: {}]   ;;  %s120_s3 = inlined_call_operand.vmem [shape: bf16[16,128], index: 3, kind: output, shape index: {}]  }
   0x1   :  { %77 = vset.pattern.permute.xlu1 %v78_v0  ;;  %76 = vset.pattern.permute.xlu0 %v78_v0  ;;  %v32_v1 = vld [vmem:[%s117_s2] sm:$0xff]  ;;  %v33_v3 = vld [vmem:[%s117_s2 + $0x8] sm:$0xff] }
   0x2   :  { %v18_v2 = vld [vmem:[%s118_s1] sm:$0xff]  ;;  %36 = vperm.xlu1 %77, %v32_v1   ;;  %v19_v4 = vld [vmem:[%s118_s1 + $0x8] sm:$0xff] }
   0x3   :  { %22 = vperm.xlu0 %76, %v18_v2   ;;  %v67_v5 = vld [vmem:[%s119_s0] sm:$0xff]  }
   0x4   :  { %v68_v6 = vunpack.c.l.bf16 %v67_v5  ;;  %v69_v10 = vunpack.c.h.bf16 %v67_v5 }
   0x6   :  { %41 = vperm.xlu1 %77, %v33_v3  }
   0x7   :  { %27 = vperm.xlu0 %76, %v19_v4  }
  0x7d   :  { %v37_v7 = vpop.permute.xlu1 %36 }
  0x7e   :  { %v23_v8 = vpop.permute.xlu0 %22 }
  0x7f   :  { %v30_v9 = vmul.f32 %v68_v6, %v23_v8 }
  0x81   :  { %v44_v12 = vadd.f32 %v37_v7, %v30_v9  ;;  %v42_v14 = vpop.permute.xlu1 %41 }
  0x82   :  { %v28_v11 = vpop.permute.xlu0 %27 }
  0x83   :  { %v31_v13 = vmul.f32 %v69_v10, %v28_v11  ;;  %v46_v16 = vmax.f32 %v44_v12, 0.0 }
  0x85   :  { %v45_v15 = vadd.f32 %v42_v14, %v31_v13 }
  0x87   :  { %v47_v17 = vmax.f32 %v45_v15, 0.0 }
  0x89   :  { %v73_v18 = vpack.c.bf16 %v47_v17, %v46_v16 }
  0x8b   :  { %74 = vst [vmem:[%s120_s3] sm:$0xff] %v73_v18  }

// kernel: generator_forward.9
= control target key start
LH: loop header
LB: loop body
LE: loop exit
PB: predicated region body
PF: predicated region fallthrough
CT: control target
= control target key end

     0   :  { %v385_v1 = vmov 0.0   ;;  %vm386_vm0 = vmmov 0   ;;  %vm177_vm1 = vcmask 261120   ;;  %vm283_vm2 = vcmask 7168   ;;  %s479_s0 = inlined_call_operand.vmem [shape: bf16[288,128], index: 0, kind: input, shape index: {}]   ;;  %s480_s1 = inlined_call_operand.vmem [shape: bf16[16,288], index: 1, kind: input, shape index: {}]   ;;  %s481_s2 = inlined_call_operand.vmem [shape: bf16[16,128], index: 2, kind: output, shape index: {0}]   ;;  %s482_s3 = inlined_call_operand.vmem [shape: f32[16,2], index: 3, kind: output, shape index: {1}]  }
   0x1   :  { %v363_v0 = vld [vmem:[%s479_s0 + $0x78] sm:$0xff]   ;;  %353 = vmatprep.subr.bf16.mxu1 %v385_v1  ;;  %357 = vmatprep.mubr.msk.bf16.mxu1 %vm386_vm0, %v385_v1  ;;  %v365_v3 = vld [vmem:[%s479_s0 + $0x70] sm:$0xff]   ;;  %v367_v5 = vld [vmem:[%s479_s0 + $0x68] sm:$0xff]   ;;  %vm286_vm3 = vcmask 15360  }
   0x2   :  { %v364_v2 = vld [vmem:[%s479_s0 + $0x38] sm:$0xff]   ;;  %328 = vmatprep.subr.bf16.mxu0 %v363_v0  ;;  %v366_v4 = vld [vmem:[%s479_s0 + $0x30] sm:$0xff]   ;;  %v368_v6 = vld [vmem:[%s479_s0 + $0x28] sm:$0xff]  }
   0x3   :  { %329 = vmatpush3.bf16.msra.mxu0 %v364_v2  ;;  %v369_v7 = vld [vmem:[%s479_s0 + $0x60] sm:$0xff]   ;;  %v371_v9 = vld [vmem:[%s479_s0 + $0x58] sm:$0xff]   ;;  %v375_v10 = vld [vmem:[%s479_s0 + $0x88] sm:$0xff]  }
   0x4   :  { %330 = vmatprep.subr.bf16.mxu0 %v365_v3  ;;  %v370_v8 = vld [vmem:[%s479_s0 + $0x20] sm:$0xff]   ;;  %v372_v11 = vld [vmem:[%s479_s0 + $0x18] sm:$0xff]   ;;  %354 = vmatpush3.bf16.msra.mxu1 %v375_v10  ;;  %v373_v13 = vld [vmem:[%s479_s0 + $0x50] sm:$0xff]  }
   0x5   :  { %355 = vmatprep.subr.bf16.mxu1 %v385_v1  ;;  %v378_v12 = vld [vmem:[%s479_s0 + $0x80] sm:$0xff]   ;;  %v381_v14 = vld [vmem:[%s480_s1 + $0x8] ss:$12 sps:$4 sm:$0xff]  }
   0x6   :  { %v374_v15 = vld [vmem:[%s479_s0 + $0x10] sm:$0xff]   ;;  %v376_v16 = vld [vmem:[%s479_s0 + $0x48] sm:$0xff]   ;;  %v379_v19 = vld [vmem:[%s479_s0 + $0x40] sm:$0xff]  }
   0x7   :  { %331 = vmatpush3.bf16.msra.mxu0 %v366_v4  ;;  %v384_v17 = vld [vmem:[%s480_s1 + $0x4] ss:$12 sps:$4 sm:$0xff]   ;;  %v377_v18 = vld [vmem:[%s479_s0 + $0x8] sm:$0xff]  }
   0x8   :  { %332 = vmatprep.subr.bf16.mxu0 %v367_v5  ;;  %356 = vmatpush3.bf16.msra.mxu1 %v378_v12  ;;  %v380_v20 = vld [vmem:[%s479_s0] sm:$0xff]  }
   0x9   :  { %213 = vmatprep.mubr.bf16.mxu0 %v384_v17  ;;  %v382_v21 = vld [vmem:[%s480_s1] ss:$12 sps:$4 sm:$0xff]  }
   0xb   :  { %333 = vmatpush3.bf16.msra.mxu0 %v368_v6  ;;  %358 = vmatmul.mubr.msk.bf16.vlgmr.msra.gmra.mxu1 %vm177_vm1, %v381_v14 }
   0xc   :  { %334 = vmatprep.subr.bf16.mxu0 %v369_v7 }
   0xf   :  { %335 = vmatpush3.bf16.msra.mxu0 %v370_v8 }
  0x10   :  { %336 = vmatprep.subr.bf16.mxu0 %v371_v9 }
  0x13   :  { %337 = vmatpush3.bf16.msra.mxu0 %v372_v11 }
  0x14   :  { %338 = vmatprep.subr.bf16.mxu0 %v373_v13 }
  0x17   :  { %339 = vmatpush3.bf16.msra.mxu0 %v374_v15 }
  0x18   :  { %340 = vmatprep.subr.bf16.mxu0 %v376_v16 }
  0x1b   :  { %341 = vmatpush3.bf16.msra.mxu0 %v377_v18 }
  0x1c   :  { %342 = vmatprep.subr.bf16.mxu0 %v379_v19 }
  0x1f   :  { %343 = vmatpush3.bf16.msra.mxu0 %v380_v20 }
  0x22   :  { %214 = vmatmul.mubr.bf16.vlgmr.msra.gmra.mxu0 %v382_v21 }
  0xcb   :  { %v256_v22 = vpop.f32.mrf.mxu1 }
  0xcd   :  { %v359_v23 = vpop.f32.mrf.mxu1 }
  0xcf   :  { %v259_v24 = vpop.f32.mrf.mxu1 }
  0xd1   :  { %v360_v25 = vpop.f32.mrf.mxu1 }
  0xe2   :  { %v344_v26 = vpop.f32.mrf.mxu0 }
  0xe4   :  { %v345_v27 = vpop.f32.mrf.mxu0 }
  0xe5   :  { %v346_v28 = vadd.f32 %v345_v27, %v344_v26 }
  0xe6   :  { %v347_v29 = vpop.f32.mrf.mxu0 }
  0xe7   :  { %v257_v30 = vadd.f32 %v346_v28, %v256_v22 }
  0xe8   :  { %v348_v31 = vpop.f32.mrf.mxu0 }
  0xe9   :  { %v349_v32 = vadd.f32 %v348_v31, %v347_v29  ;;  %273 = vadd.xlane.f32.xlu0 %v257_v30  ;;  %v277_v33 = vmul.f32 %v257_v30, %v257_v30 }
  0xeb   :  { %v260_v34 = vadd.f32 %v349_v32, %v259_v24  ;;  %279 = vadd.xlane.f32.xlu1 %v277_v33 }
  0xed   :  { %v326_v35 = vpack.c.bf16 %v260_v34, %v257_v30  ;;  %275 = vadd.xlane.f32.xlu0 %v260_v34  ;;  %v278_v36 = vmul.f32 %v260_v34, %v260_v34 }
  0xef   :  { %327 = vst [vmem:[%s481_s2] sm:$0xff] %v326_v35   ;;  %281 = vadd.xlane.f32.xlu1 %v278_v36 }
 0x172   :  { %v274_v37 = vpop.xlane.xlu0 %273 }
 0x174   :  { %v280_v38 = vpop.xlane.xlu1 %279 }
 0x175   :  { %v284_v39 = vsel %vm283_vm2, %v274_v37, %v280_v38 }
 0x176   :  { %287 = vst.msk [vmem:[%s482_s3] sm:$0xff] %vm286_vm3, %v284_v39  ;;  %v276_v40 = vpop.xlane.xlu0 %275 }
 0x178   :  { %v282_v41 = vpop.xlane.xlu1 %281 }
 0x179   :  { %v285_v42 = vsel %vm283_vm2, %v276_v40, %v282_v41 }
 0x17a   :  { %288 = vst.msk [vmem:[%s482_s3 + $0x8] sm:$0xff] %vm286_vm3, %v285_v42 }

// kernel: generator_forward.11
= control target key start
LH: loop header
LB: loop body
LE: loop exit
PB: predicated region body
PF: predicated region fallthrough
CT: control target
= control target key end

     0   :  { %vm519_vm0 = vcmask 7168   ;;  %vm521_vm1 = vcmask 15360   ;;  %s923_s0 = inlined_call_operand.vmem [shape: bf16[256,512], index: 0, kind: input, shape index: {}]   ;;  %s924_s1 = inlined_call_operand.vmem [shape: bf16[8,256], index: 1, kind: input, shape index: {}]   ;;  %s925_s2 = inlined_call_operand.vmem [shape: bf16[8,512], index: 2, kind: output, shape index: {0}]   ;;  %s926_s3 = inlined_call_operand.vmem [shape: f32[8,2], index: 3, kind: output, shape index: {1}]  }
   0x1   :  { %v601_v0 = vld [vmem:[%s923_s0 + $0xe4] ss:$16 sps:$4 sm:$0xff]   ;;  %v603_v1 = vld [vmem:[%s923_s0 + $0xec] ss:$16 sps:$4 sm:$0xff]   ;;  %v605_v2 = vld [vmem:[%s923_s0 + $0xe0] ss:$16 sps:$4 sm:$0xff]  }
   0x2   :  { %405 = vmatprep.subr.bf16.mxu0 %v601_v0  ;;  %v606_v3 = vld [vmem:[%s923_s0 + $0xe8] ss:$16 sps:$4 sm:$0xff]   ;;  %446 = vmatprep.subr.bf16.mxu1 %v603_v1  ;;  %v607_v4 = vld [vmem:[%s923_s0 + $0xc4] ss:$16 sps:$4 sm:$0xff]   ;;  %v609_v5 = vld [vmem:[%s923_s0 + $0xcc] ss:$16 sps:$4 sm:$0xff]  }
   0x3   :  { %406 = vmatpush1.bf16.msra.mxu0 %v605_v2  ;;  %447 = vmatpush1.bf16.msra.mxu1 %v606_v3  ;;  %v611_v6 = vld [vmem:[%s923_s0 + $0xc0] ss:$16 sps:$4 sm:$0xff]   ;;  %v612_v7 = vld [vmem:[%s923_s0 + $0xc8] ss:$16 sps:$4 sm:$0xff]   ;;  %v613_v8 = vld [vmem:[%s923_s0 + $0xa4] ss:$16 sps:$4 sm:$0xff]  }
   0x4   :  { %407 = vmatprep.subr.bf16.mxu0 %v607_v4  ;;  %448 = vmatprep.subr.bf16.mxu1 %v609_v5  ;;  %v615_v9 = vld [vmem:[%s923_s0 + $0xac] ss:$16 sps:$4 sm:$0xff]   ;;  %v617_v10 = vld [vmem:[%s923_s0 + $0xa0] ss:$16 sps:$4 sm:$0xff]   ;;  %v618_v11 = vld [vmem:[%s923_s0 + $0xa8] ss:$16 sps:$4 sm:$0xff]  }
   0x5   :  { %v619_v12 = vld [vmem:[%s923_s0 + $0x84] ss:$16 sps:$4 sm:$0xff]   ;;  %v621_v13 = vld [vmem:[%s923_s0 + $0x8c] ss:$16 sps:$4 sm:$0xff]   ;;  %v623_v14 = vld [vmem:[%s923_s0 + $0x80] ss:$16 sps:$4 sm:$0xff]  }
   0x6   :  { %v624_v15 = vld [vmem:[%s923_s0 + $0x88] ss:$16 sps:$4 sm:$0xff]   ;;  %v625_v16 = vld [vmem:[%s923_s0 + $0x64] ss:$16 sps:$4 sm:$0xff]   ;;  %v627_v17 = vld [vmem:[%s923_s0 + $0x6c] ss:$16 sps:$4 sm:$0xff]  }
   0x7   :  { %408 = vmatpush1.bf16.msra.mxu0 %v611_v6  ;;  %449 = vmatpush1.bf16.msra.mxu1 %v612_v7  ;;  %v629_v18 = vld [vmem:[%s923_s0 + $0x60] ss:$16 sps:$4 sm:$0xff]   ;;  %v630_v19 = vld [vmem:[%s923_s0 + $0x68] ss:$16 sps:$4 sm:$0xff]   ;;  %v631_v20 = vld [vmem:[%s923_s0 + $0x44] ss:$16 sps:$4 sm:$0xff]  }
   0x8   :  { %409 = vmatprep.subr.bf16.mxu0 %v613_v8  ;;  %450 = vmatprep.subr.bf16.mxu1 %v615_v9  ;;  %v633_v21 = vld [vmem:[%s923_s0 + $0x4c] ss:$16 sps:$4 sm:$0xff]   ;;  %v635_v22 = vld [vmem:[%s923_s0 + $0x40] ss:$16 sps:$4 sm:$0xff]   ;;  %v636_v23 = vld [vmem:[%s923_s0 + $0x48] ss:$16 sps:$4 sm:$0xff]  }
   0x9   :  { %v637_v24 = vld [vmem:[%s923_s0 + $0x24] ss:$16 sps:$4 sm:$0xff]   ;;  %v639_v25 = vld [vmem:[%s923_s0 + $0x2c] ss:$16 sps:$4 sm:$0xff]   ;;  %v641_v26 = vld [vmem:[%s923_s0 + $0x20] ss:$16 sps:$4 sm:$0xff]  }
   0xa   :  { %v642_v27 = vld [vmem:[%s923_s0 + $0x28] ss:$16 sps:$4 sm:$0xff]   ;;  %v643_v28 = vld [vmem:[%s923_s0 + $0x4] ss:$16 sps:$4 sm:$0xff]   ;;  %v645_v29 = vld [vmem:[%s923_s0 + $0xc] ss:$16 sps:$4 sm:$0xff]  }
   0xb   :  { %410 = vmatpush1.bf16.msra.mxu0 %v617_v10  ;;  %451 = vmatpush1.bf16.msra.mxu1 %v618_v11  ;;  %v647_v30 = vld [vmem:[%s923_s0] ss:$16 sps:$4 sm:$0xff]   ;;  %v648_v31 = vld [vmem:[%s923_s0 + $0x8] ss:$16 sps:$4 sm:$0xff]   ;;  %v649_v32 = vld [vmem:[%s923_s0 + $0x1e4] ss:$16 sps:$4 sm:$0xff]  }
   0xc   :  { %411 = vmatprep.subr.bf16.mxu0 %v619_v12  ;;  %452 = vmatprep.subr.bf16.mxu1 %v621_v13  ;;  %v651_v33 = vld [vmem:[%s923_s0 + $0x1ec] ss:$16 sps:$4 sm:$0xff]   ;;  %v653_v34 = vld [vmem:[%s923_s0 + $0x1e0] ss:$16 sps:$4 sm:$0xff]   ;;  %v654_v35 = vld [vmem:[%s923_s0 + $0x1e8] ss:$16 sps:$4 sm:$0xff]  }
   0xd   :  { %v655_v36 = vld [vmem:[%s923_s0 + $0x1c4] ss:$16 sps:$4 sm:$0xff]   ;;  %v657_v37 = vld [vmem:[%s923_s0 + $0x1cc] ss:$16 sps:$4 sm:$0xff]   ;;  %v659_v38 = vld [vmem:[%s923_s0 + $0x1c0] ss:$16 sps:$4 sm:$0xff]  }
   0xe   :  { %v660_v39 = vld [vmem:[%s923_s0 + $0x1c8] ss:$16 sps:$4 sm:$0xff]   ;;  %v661_v40 = vld [vmem:[%s923_s0 + $0x1a4] ss:$16 sps:$4 sm:$0xff]   ;;  %v663_v41 = vld [vmem:[%s923_s0 + $0x1ac] ss:$16 sps:$4 sm:$0xff]  }
   0xf   :  { %412 = vmatpush1.bf16.msra.mxu0 %v623_v14  ;;  %453 = vmatpush1.bf16.msra.mxu1 %v624_v15  ;;  %v665_v42 = vld [vmem:[%s923_s0 + $0x1a0] ss:$16 sps:$4 sm:$0xff]   ;;  %v666_v43 = vld [vmem:[%s923_s0 + $0x1a8] ss:$16 sps:$4 sm:$0xff]   ;;  %v667_v44 = vld [vmem:[%s923_s0 + $0x184] ss:$16 sps:$4 sm:$0xff]  }
  0x10   :  { %413 = vmatprep.subr.bf16.mxu0 %v625_v16  ;;  %454 = vmatprep.subr.bf16.mxu1 %v627_v17  ;;  %v669_v45 = vld [vmem:[%s923_s0 + $0x18c] ss:$16 sps:$4 sm:$0xff]   ;;  %v13_v46 = vld [vmem:[%s924_s1] sm:$0xff]  ;;  %v672_v49 = vld [vmem:[%s923_s0 + $0x188] ss:$16 sps:$4 sm:$0xff]  }
  0x11   :  { %v532_v47 = vcombine.high %v13_v46, %v13_v46  ;;  %v671_v48 = vld [vmem:[%s923_s0 + $0x180] ss:$16 sps:$4 sm:$0xff]   ;;  %v673_v50 = vld [vmem:[%s923_s0 + $0x164] ss:$16 sps:$4 sm:$0xff]   ;;  %v675_v51 = vld [vmem:[%s923_s0 + $0x16c] ss:$16 sps:$4 sm:$0xff]   ;;  %v531_v2 = vcombine.low %v13_v46, %v13_v46 }
  0x12   :  { %v677_v52 = vld [vmem:[%s923_s0 + $0x160] ss:$16 sps:$4 sm:$0xff]   ;;  %v678_v53 = vld [vmem:[%s923_s0 + $0x168] ss:$16 sps:$4 sm:$0xff]   ;;  %v679_v54 = vld [vmem:[%s923_s0 + $0x144] ss:$16 sps:$4 sm:$0xff]  }
  0x13   :  { %414 = vmatpush1.bf16.msra.mxu0 %v629_v18  ;;  %455 = vmatpush1.bf16.msra.mxu1 %v630_v19  ;;  %v681_v55 = vld [vmem:[%s923_s0 + $0x14c] ss:$16 sps:$4 sm:$0xff]   ;;  %v683_v56 = vld [vmem:[%s923_s0 + $0x140] ss:$16 sps:$4 sm:$0xff]   ;;  %v684_v57 = vld [vmem:[%s923_s0 + $0x148] ss:$16 sps:$4 sm:$0xff]  }
  0x14   :  { %415 = vmatprep.subr.bf16.mxu0 %v631_v20  ;;  %456 = vmatprep.subr.bf16.mxu1 %v633_v21  ;;  %v685_v58 = vld [vmem:[%s923_s0 + $0x124] ss:$16 sps:$4 sm:$0xff]   ;;  %v687_v59 = vld [vmem:[%s923_s0 + $0x12c] ss:$16 sps:$4 sm:$0xff]   ;;  %v689_v60 = vld [vmem:[%s923_s0 + $0x120] ss:$16 sps:$4 sm:$0xff]  }
  0x15   :  { %437 = vmatprep.mubr.bf16.mxu0 %v532_v47  ;;  %478 = vmatprep.mubr.bf16.mxu1 %v532_v47  ;;  %v690_v61 = vld [vmem:[%s923_s0 + $0x128] ss:$16 sps:$4 sm:$0xff]   ;;  %v691_v62 = vld [vmem:[%s923_s0 + $0x104] ss:$16 sps:$4 sm:$0xff]   ;;  %v693_v63 = vld [vmem:[%s923_s0 + $0x10c] ss:$16 sps:$4 sm:$0xff]  }
  0x16   :  { %v695_v0 = vld [vmem:[%s923_s0 + $0x100] ss:$16 sps:$4 sm:$0xff]   ;;  %v696_v1 = vld [vmem:[%s923_s0 + $0x108] ss:$16 sps:$4 sm:$0xff]  }
  0x17   :  { %416 = vmatpush1.bf16.msra.mxu0 %v635_v22  ;;  %457 = vmatpush1.bf16.msra.mxu1 %v636_v23 }
  0x18   :  { %417 = vmatprep.subr.bf16.mxu0 %v637_v24  ;;  %458 = vmatprep.subr.bf16.mxu1 %v639_v25 }
  0x1b   :  { %418 = vmatpush1.bf16.msra.mxu0 %v641_v26  ;;  %459 = vmatpush1.bf16.msra.mxu1 %v642_v27 }
  0x1c   :  { %419 = vmatprep.subr.bf16.mxu0 %v643_v28  ;;  %460 = vmatprep.subr.bf16.mxu1 %v645_v29 }
  0x1f   :  { %420 = vmatpush1.bf16.msra.mxu0 %v647_v30  ;;  %461 = vmatpush1.bf16.msra.mxu1 %v648_v31 }
  0x20   :  { %421 = vmatprep.subr.bf16.mxu0 %v649_v32  ;;  %462 = vmatprep.subr.bf16.mxu1 %v651_v33 }
  0x23   :  { %422 = vmatpush2.bf16.msra.mxu0 %v653_v34  ;;  %463 = vmatpush2.bf16.msra.mxu1 %v654_v35 }
  0x24   :  { %423 = vmatprep.subr.bf16.mxu0 %v655_v36  ;;  %464 = vmatprep.subr.bf16.mxu1 %v657_v37 }
  0x27   :  { %424 = vmatpush2.bf16.msra.mxu0 %v659_v38  ;;  %465 = vmatpush2.bf16.msra.mxu1 %v660_v39 }
  0x28   :  { %425 = vmatprep.subr.bf16.mxu0 %v661_v40  ;;  %466 = vmatprep.subr.bf16.mxu1 %v663_v41 }
  0x2b   :  { %426 = vmatpush2.bf16.msra.mxu0 %v665_v42  ;;  %467 = vmatpush2.bf16.msra.mxu1 %v666_v43 }
  0x2c   :  { %427 = vmatprep.subr.bf16.mxu0 %v667_v44  ;;  %468 = vmatprep.subr.bf16.mxu1 %v669_v45 }
  0x2f   :  { %428 = vmatpush2.bf16.msra.mxu0 %v671_v48  ;;  %469 = vmatpush2.bf16.msra.mxu1 %v672_v49 }
  0x30   :  { %429 = vmatprep.subr.bf16.mxu0 %v673_v50  ;;  %470 = vmatprep.subr.bf16.mxu1 %v675_v51 }
  0x33   :  { %430 = vmatpush2.bf16.msra.mxu0 %v677_v52  ;;  %471 = vmatpush2.bf16.msra.mxu1 %v678_v53 }
  0x34   :  { %431 = vmatprep.subr.bf16.mxu0 %v679_v54  ;;  %472 = vmatprep.subr.bf16.mxu1 %v681_v55 }
  0x37   :  { %432 = vmatpush2.bf16.msra.mxu0 %v683_v56  ;;  %473 = vmatpush2.bf16.msra.mxu1 %v684_v57 }
  0x38   :  { %433 = vmatprep.subr.bf16.mxu0 %v685_v58  ;;  %474 = vmatprep.subr.bf16.mxu1 %v687_v59 }
  0x3b   :  { %434 = vmatpush2.bf16.msra.mxu0 %v689_v60  ;;  %475 = vmatpush2.bf16.msra.mxu1 %v690_v61 }
  0x3c   :  { %435 = vmatprep.subr.bf16.mxu0 %v691_v62  ;;  %476 = vmatprep.subr.bf16.mxu1 %v693_v63 }
  0x3f   :  { %436 = vmatpush2.bf16.msra.mxu0 %v695_v0  ;;  %477 = vmatpush2.bf16.msra.mxu1 %v696_v1 }
  0x42   :  { %438 = vmatmul.mubr.bf16.vlgmr.msra.gmra.mxu0 %v531_v2  ;;  %479 = vmatmul.mubr.bf16.vlgmr.msra.gmra.mxu1 %v531_v2 }
 0x102   :  { %v439_v3 = vpop.f32.mrf.mxu0  ;;  %v480_v4 = vpop.f32.mrf.mxu1 }
 0x103   :  { %v510_v5 = vmul.f32 %v439_v3, %v439_v3  ;;  %v512_v6 = vmul.f32 %v480_v4, %v480_v4 }
 0x104   :  { %v441_v7 = vpop.f32.mrf.mxu0  ;;  %v482_v8 = vpop.f32.mrf.mxu1 }
 0x105   :  { %v599_v9 = vpack.c.bf16 %v441_v7, %v439_v3  ;;  %v505_v10 = vadd.f32 %v441_v7, %v439_v3  ;;  %v511_v11 = vmul.f32 %v441_v7, %v441_v7  ;;  %v600_v12 = vpack.c.bf16 %v482_v8, %v480_v4 }
 0x106   :  { %v443_v13 = vpop.f32.mrf.mxu0  ;;  %v484_v14 = vpop.f32.mrf.mxu1  ;;  %v513_v21 = vmul.f32 %v482_v8, %v482_v8 }
 0x107   :  { %503 = vst [vmem:[%s925_s2] sm:$0xff] %v599_v9  ;;  %504 = vst [vmem:[%s925_s2 + $0x8] sm:$0xff] %v600_v12  ;;  %v506_v15 = vadd.f32 %v505_v10, %v480_v4  ;;  %v514_v16 = vadd.f32 %v511_v11, %v510_v5 }
 0x108   :  { %v444_v17 = vpop.f32.mrf.mxu0  ;;  %v485_v18 = vpop.f32.mrf.mxu1 }
 0x109   :  { %v507_v19 = vadd.f32 %v506_v15, %v482_v8  ;;  %v515_v20 = vadd.f32 %v514_v16, %v512_v6 }
 0x10b   :  { %508 = vadd.xlane.f32.xlu0 %v507_v19  ;;  %v516_v22 = vadd.f32 %v515_v20, %v513_v21 }
 0x10f   :  { %517 = vadd.xlane.f32.xlu0 %v516_v22 }
 0x194   :  { %v509_v23 = vpop.xlane.xlu0 %508 }
 0x198   :  { %v518_v24 = vpop.xlane.xlu0 %517 }
 0x199   :  { %v520_v25 = vsel %vm519_vm0, %v509_v23, %v518_v24 }
 0x19a   :  { %522 = vst.msk [vmem:[%s926_s3] sm:$0xff] %vm521_vm1, %v520_v25 }

// kernel: generator_forward.12
= control target key start
LH: loop header
LB: loop body
LE: loop exit
PB: predicated region body
PF: predicated region fallthrough
CT: control target
= control target key end

     0   :  { %v72_v0 = vmov 0   ;;  %s111_s1 = inlined_call_operand.vmem [shape: f32[8,1], index: 1, kind: input, shape index: {}]   ;;  %s112_s2 = inlined_call_operand.vmem [shape: f32[8,1], index: 2, kind: input, shape index: {}]   ;;  %s113_s0 = inlined_call_operand.vmem [shape: bf16[8,512], index: 0, kind: input, shape index: {}]   ;;  %s114_s3 = inlined_call_operand.vmem [shape: bf16[8,512], index: 3, kind: output, shape index: {}]  }
   0x1   :  { %71 = vset.pattern.permute.xlu0 %v72_v0  ;;  %v20_v1 = vld [vmem:[%s111_s1] sm:$0xff]  ;;  %v15_v4 = vld [vmem:[%s113_s0 + $0x8] sm:$0xff] }
   0x2   :  { %23 = vperm.xlu0 %71, %v20_v1   ;;  %v30_v2 = vld [vmem:[%s112_s2] sm:$0xff]  ;;  %v18_v7 = vunpack.c.l.bf16 %v15_v4  ;;  %v19_v8 = vunpack.c.h.bf16 %v15_v4 }
   0x3   :  { %v14_v3 = vld [vmem:[%s113_s0] sm:$0xff] }
   0x4   :  { %v16_v5 = vunpack.c.l.bf16 %v14_v3  ;;  %v17_v6 = vunpack.c.h.bf16 %v14_v3 }
   0x6   :  { %33 = vperm.xlu0 %71, %v30_v2  }
  0x7d   :  { %v24_v9 = vpop.permute.xlu0 %23 }
  0x7e   :  { %v26_v10 = vmul.f32 %v24_v9, %v16_v5  ;;  %v27_v11 = vmul.f32 %v24_v9, %v17_v6  ;;  %v28_v12 = vmul.f32 %v24_v9, %v18_v7  ;;  %v29_v13 = vmul.f32 %v24_v9, %v19_v8 }
  0x81   :  { %v34_v14 = vpop.permute.xlu0 %33 }
  0x82   :  { %v36_v15 = vadd.f32 %v34_v14, %v26_v10  ;;  %v37_v16 = vadd.f32 %v34_v14, %v27_v11  ;;  %v38_v17 = vadd.f32 %v34_v14, %v28_v12  ;;  %v39_v18 = vadd.f32 %v34_v14, %v29_v13 }
  0x84   :  { %v40_v19 = vmax.f32 %v36_v15, 0.0  ;;  %v41_v20 = vmax.f32 %v37_v16, 0.0  ;;  %v42_v21 = vmax.f32 %v38_v17, 0.0  ;;  %v43_v22 = vmax.f32 %v39_v18, 0.0 }
  0x86   :  { %v68_v23 = vpack.c.bf16 %v41_v20, %v40_v19  ;;  %v69_v24 = vpack.c.bf16 %v43_v22, %v42_v21 }
  0x88   :  { %60 = vst [vmem:[%s114_s3] sm:$0xff] %v68_v23  ;;  %61 = vst [vmem:[%s114_s3 + $0x8] sm:$0xff] %v69_v24 }

// kernel: generator_forward.13
= control target key start
LH: loop header
LB: loop body
LE: loop exit
PB: predicated region body
PF: predicated region fallthrough
CT: control target
= control target key end

     0   :  { %s741_s9 = smov 0   ;;  %s743_s10 = smov 0   ;;  %s898_s0 = inlined_call_operand.vmem [shape: bf16[128,2048], index: 0, kind: input, shape index: {}]   ;;  %s899_s1 = inlined_call_operand.vmem [shape: bf16[8,128], index: 1, kind: input, shape index: {}]   ;;  %s900_s2 = inlined_call_operand.vmem [shape: f32[8,2048], index: 2, kind: output, shape index: {}]  }
   0x1   :  { %s745_s11 = smov 0  }
   0x2 LB: > { %s574_s12 = sadd.s32 4294967295, %s723_s11   ;;  %s758_s13 = sadd.s32 1, %s723_s11   ;;  %s723_s11 = sphi %s745_s11, %s903_s11   ;;  %s719_s10 = sphi %s743_s10, %s902_s10   ;;  %s715_s9 = sphi %s741_s9, %s901_s9  }
   0x3   : > { %s16_s14 = ssub.s32 %s723_s11, %s758_s13  ;;  %s19_s15 = sadd.s32 1, %s719_s10 }
   0x4   : > { %p17_p0 = scmp.eq.s32.totalorder %s16_s14, 0  ;;  %p26_p1 = scmp.ne.s32.totalorder %s719_s10, %s715_s9 }
   0x5   : > { %p27_p2 = scmp.eq.s32.totalorder %s723_s11, 0  ;;  %p577_p4 = scmp.ge.s32.totalorder %s723_s11, 4 }
   0x6   : > { %s767_s16 = scalar_select %p17_p0, %s719_s10, %s19_s15  }
   0x7   : > { %p28_p3 = por %p27_p2, %p26_p1  ;;  %102 = sbr.rel (%p577_p4) target bundleno = 32 (0x20), region = 20 }
   0xc   : > { %105 = sbr.rel (!%p28_p3) target bundleno = 32 (0x20), region = 24  ;;  %s107_s17 = sand.u32 (%p28_p3), 1, %s719_s10  }
   0xd   : > { %s619_s18 = sshll.u32 (%p28_p3), %s723_s11, 4  ;;  %s578_s19 = sshll.u32 (%p28_p3), %s107_s17, 8 }
   0xe   : > { %s775_s22 = scalar_lea.vmem (%p28_p3), %s898_s0, %s619_s18  ;;  %s780_s23 = scalar_lea.vmem (%p28_p3), [#allocation2], %s578_s19 }
   0xf   : > { %v125_v0 = vld [vmem:[%s775_s22] sm:$0xff] (%p28_p3)  ;;  %v127_v1 = vld [vmem:[%s775_s22 + $0x8] sm:$0xff] (%p28_p3) }
  0x10   : > { %v129_v2 = vld [vmem:[%s775_s22 + $0x40] sm:$0xff] (%p28_p3)  ;;  %126 = vst [vmem:[%s780_s23] sm:$0xff] (%p28_p3), %v125_v0  ;;  %128 = vst [vmem:[%s780_s23 + $0x8] sm:$0xff] (%p28_p3), %v127_v1  ;;  %v131_v3 = vld [vmem:[%s775_s22 + $0x48] sm:$0xff] (%p28_p3) }
  0x11   : > { %130 = vst [vmem:[%s780_s23 + $0x10] sm:$0xff] %v129_v2  ;;  %v133_v4 = vld [vmem:[%s775_s22 + $0x80] sm:$0xff]  ;;  %v135_v5 = vld [vmem:[%s775_s22 + $0x88] sm:$0xff]  ;;  %132 = vst [vmem:[%s780_s23 + $0x18] sm:$0xff] %v131_v3 }
  0x12   : > { %134 = vst [vmem:[%s780_s23 + $0x20] sm:$0xff] %v133_v4  ;;  %136 = vst [vmem:[%s780_s23 + $0x28] sm:$0xff] %v135_v5  ;;  %v137_v6 = vld [vmem:[%s775_s22 + $0xc0] sm:$0xff]  ;;  %v139_v7 = vld [vmem:[%s775_s22 + $0xc8] sm:$0xff] }
  0x13   : > { %v141_v8 = vld [vmem:[%s775_s22 + $0x100] sm:$0xff]  ;;  %138 = vst [vmem:[%s780_s23 + $0x30] sm:$0xff] %v137_v6  ;;  %140 = vst [vmem:[%s780_s23 + $0x38] sm:$0xff] %v139_v7  ;;  %v143_v9 = vld [vmem:[%s775_s22 + $0x108] sm:$0xff] }
  0x14   : > { %142 = vst [vmem:[%s780_s23 + $0x40] sm:$0xff] %v141_v8  ;;  %v145_v10 = vld [vmem:[%s775_s22 + $0x140] sm:$0xff]  ;;  %v147_v11 = vld [vmem:[%s775_s22 + $0x148] sm:$0xff]  ;;  %144 = vst [vmem:[%s780_s23 + $0x48] sm:$0xff] %v143_v9 }
  0x15   : > { %146 = vst [vmem:[%s780_s23 + $0x50] sm:$0xff] %v145_v10  ;;  %148 = vst [vmem:[%s780_s23 + $0x58] sm:$0xff] %v147_v11  ;;  %v149_v12 = vld [vmem:[%s775_s22 + $0x180] sm:$0xff]  ;;  %v151_v13 = vld [vmem:[%s775_s22 + $0x188] sm:$0xff] }
  0x16   : > { %v153_v14 = vld [vmem:[%s775_s22 + $0x1c0] sm:$0xff]  ;;  %150 = vst [vmem:[%s780_s23 + $0x60] sm:$0xff] %v149_v12  ;;  %152 = vst [vmem:[%s780_s23 + $0x68] sm:$0xff] %v151_v13  ;;  %v155_v15 = vld [vmem:[%s775_s22 + $0x1c8] sm:$0xff] }
  0x17   : > { %154 = vst [vmem:[%s780_s23 + $0x70] sm:$0xff] %v153_v14  ;;  %v157_v16 = vld [vmem:[%s775_s22 + $0x200] sm:$0xff]  ;;  %v159_v17 = vld [vmem:[%s775_s22 + $0x208] sm:$0xff]  ;;  %156 = vst [vmem:[%s780_s23 + $0x78] sm:$0xff] %v155_v15 }
  0x18   : > { %158 = vst [vmem:[%s780_s23 + $0x80] sm:$0xff] %v157_v16  ;;  %160 = vst [vmem:[%s780_s23 + $0x88] sm:$0xff] %v159_v17  ;;  %v161_v18 = vld [vmem:[%s775_s22 + $0x240] sm:$0xff]  ;;  %v163_v19 = vld [vmem:[%s775_s22 + $0x248] sm:$0xff] }
  0x19   : > { %v165_v20 = vld [vmem:[%s775_s22 + $0x280] sm:$0xff]  ;;  %162 = vst [vmem:[%s780_s23 + $0x90] sm:$0xff] %v161_v18  ;;  %164 = vst [vmem:[%s780_s23 + $0x98] sm:$0xff] %v163_v19  ;;  %v167_v21 = vld [vmem:[%s775_s22 + $0x288] sm:$0xff] }
  0x1a   : > { %166 = vst [vmem:[%s780_s23 + $0xa0] sm:$0xff] %v165_v20  ;;  %v169_v22 = vld [vmem:[%s775_s22 + $0x2c0] sm:$0xff]  ;;  %v171_v23 = vld [vmem:[%s775_s22 + $0x2c8] sm:$0xff]  ;;  %168 = vst [vmem:[%s780_s23 + $0xa8] sm:$0xff] %v167_v21 }
  0x1b   : > { %170 = vst [vmem:[%s780_s23 + $0xb0] sm:$0xff] %v169_v22  ;;  %172 = vst [vmem:[%s780_s23 + $0xb8] sm:$0xff] %v171_v23  ;;  %v173_v24 = vld [vmem:[%s775_s22 + $0x300] sm:$0xff]  ;;  %v175_v25 = vld [vmem:[%s775_s22 + $0x308] sm:$0xff] }
  0x1c   : > { %v177_v26 = vld [vmem:[%s775_s22 + $0x340] sm:$0xff]  ;;  %174 = vst [vmem:[%s780_s23 + $0xc0] sm:$0xff] %v173_v24  ;;  %176 = vst [vmem:[%s780_s23 + $0xc8] sm:$0xff] %v175_v25  ;;  %v179_v27 = vld [vmem:[%s775_s22 + $0x348] sm:$0xff] }
  0x1d   : > { %178 = vst [vmem:[%s780_s23 + $0xd0] sm:$0xff] %v177_v26  ;;  %v181_v28 = vld [vmem:[%s775_s22 + $0x380] sm:$0xff]  ;;  %v183_v29 = vld [vmem:[%s775_s22 + $0x388] sm:$0xff]  ;;  %180 = vst [vmem:[%s780_s23 + $0xd8] sm:$0xff] %v179_v27 }
  0x1e   : > { %182 = vst [vmem:[%s780_s23 + $0xe0] sm:$0xff] %v181_v28  ;;  %184 = vst [vmem:[%s780_s23 + $0xe8] sm:$0xff] %v183_v29  ;;  %v185_v30 = vld [vmem:[%s775_s22 + $0x3c0] sm:$0xff]  ;;  %v187_v31 = vld [vmem:[%s775_s22 + $0x3c8] sm:$0xff] }
  0x1f   : > { %186 = vst [vmem:[%s780_s23 + $0xf0] sm:$0xff] %v185_v30  ;;  %188 = vst [vmem:[%s780_s23 + $0xf8] sm:$0xff] %v187_v31 }
  0x20 PF: > { %p581_p5 = scmp.ge.s32.totalorder %s723_s11, 1  ;;  %p193_p6 = scmp.lt.s32.totalorder %s723_s11, 5 }
  0x22   : > { %p194_p7 = pnand %p581_p5, %p193_p6 }
  0x23   : > { %s200_s24 = sand.u32 (!%p194_p7), 1, %s715_s9   ;;  %s583_s29 = sshll.u32 (!%p194_p7), %s574_s12, 2 }
  0x24   : > { %197 = sbr.rel (%p194_p7) target bundleno = 286 (0x11e), region = 47  ;;  %s582_s25 = sshll.u32 (!%p194_p7), %s200_s24, 8 }
  0x25   : > { %s846_s26 = scalar_lea.vmem (!%p194_p7), [#allocation2], %s582_s25  ;;  %p223_p8 = scmp.lt.s32.totalorder (!%p194_p7), %s583_s29, 15 }
  0x29   : > { %v725_v32 = vmov 0   ;;  %v645_v33 = vld [vmem:[%s846_s26 + $0xe4] ss:$16 sps:$4 sm:$0xff]   ;;  %v647_v34 = vld [vmem:[%s846_s26 + $0xec] ss:$16 sps:$4 sm:$0xff]   ;;  %s905_s29 = smov (!%p223_p8, %s583_s29), 15 }
  0x2a   : > { %454 = vmatprep.mubr.bf16.mxu0 %v725_v32  ;;  %495 = vmatprep.mubr.bf16.mxu1 %v725_v32  ;;  %v649_v35 = vld [vmem:[%s846_s26 + $0xe0] ss:$16 sps:$4 sm:$0xff]   ;;  %v650_v36 = vld [vmem:[%s846_s26 + $0xe8] ss:$16 sps:$4 sm:$0xff]   ;;  %v651_v37 = vld [vmem:[%s846_s26 + $0xc4] ss:$16 sps:$4 sm:$0xff]  }
  0x2b   : > { %422 = vmatprep.subr.bf16.mxu0 %v645_v33  ;;  %463 = vmatprep.subr.bf16.mxu1 %v647_v34  ;;  %v653_v38 = vld [vmem:[%s846_s26 + $0xcc] ss:$16 sps:$4 sm:$0xff]   ;;  %v655_v39 = vld [vmem:[%s846_s26 + $0xc0] ss:$16 sps:$4 sm:$0xff]   ;;  %v656_v40 = vld [vmem:[%s846_s26 + $0xc8] ss:$16 sps:$4 sm:$0xff]  }
  0x2c   : > { %423 = vmatpush1.bf16.msra.mxu0 %v649_v35  ;;  %464 = vmatpush1.bf16.msra.mxu1 %v650_v36  ;;  %v657_v41 = vld [vmem:[%s846_s26 + $0xa4] ss:$16 sps:$4 sm:$0xff]   ;;  %v659_v42 = vld [vmem:[%s846_s26 + $0xac] ss:$16 sps:$4 sm:$0xff]   ;;  %v661_v43 = vld [vmem:[%s846_s26 + $0xa0] ss:$16 sps:$4 sm:$0xff]  }
  0x2d   : > { %424 = vmatprep.subr.bf16.mxu0 %v651_v37  ;;  %465 = vmatprep.subr.bf16.mxu1 %v653_v38  ;;  %v662_v44 = vld [vmem:[%s846_s26 + $0xa8] ss:$16 sps:$4 sm:$0xff]   ;;  %v663_v45 = vld [vmem:[%s846_s26 + $0x84] ss:$16 sps:$4 sm:$0xff]   ;;  %v665_v46 = vld [vmem:[%s846_s26 + $0x8c] ss:$16 sps:$4 sm:$0xff]  }
  0x2e   : > { %v667_v47 = vld [vmem:[%s846_s26 + $0x80] ss:$16 sps:$4 sm:$0xff]   ;;  %v668_v48 = vld [vmem:[%s846_s26 + $0x88] ss:$16 sps:$4 sm:$0xff]   ;;  %v669_v49 = vld [vmem:[%s846_s26 + $0x64] ss:$16 sps:$4 sm:$0xff]  }
  0x2f   : > { %v671_v50 = vld [vmem:[%s846_s26 + $0x6c] ss:$16 sps:$4 sm:$0xff]   ;;  %v673_v51 = vld [vmem:[%s846_s26 + $0x60] ss:$16 sps:$4 sm:$0xff]   ;;  %v674_v52 = vld [vmem:[%s846_s26 + $0x68] ss:$16 sps:$4 sm:$0xff]  }
  0x30   : > { %425 = vmatpush1.bf16.msra.mxu0 %v655_v39  ;;  %466 = vmatpush1.bf16.msra.mxu1 %v656_v40  ;;  %v675_v53 = vld [vmem:[%s846_s26 + $0x44] ss:$16 sps:$4 sm:$0xff]   ;;  %v677_v54 = vld [vmem:[%s846_s26 + $0x4c] ss:$16 sps:$4 sm:$0xff]   ;;  %v679_v55 = vld [vmem:[%s846_s26 + $0x40] ss:$16 sps:$4 sm:$0xff]  }
  0x31   : > { %426 = vmatprep.subr.bf16.mxu0 %v657_v41  ;;  %467 = vmatprep.subr.bf16.mxu1 %v659_v42  ;;  %v680_v56 = vld [vmem:[%s846_s26 + $0x48] ss:$16 sps:$4 sm:$0xff]   ;;  %v681_v57 = vld [vmem:[%s846_s26 + $0x24] ss:$16 sps:$4 sm:$0xff]   ;;  %v683_v58 = vld [vmem:[%s846_s26 + $0x2c] ss:$16 sps:$4 sm:$0xff]  }
  0x32   : > { %v685_v59 = vld [vmem:[%s846_s26 + $0x20] ss:$16 sps:$4 sm:$0xff]   ;;  %v686_v60 = vld [vmem:[%s846_s26 + $0x28] ss:$16 sps:$4 sm:$0xff]   ;;  %v687_v61 = vld [vmem:[%s846_s26 + $0x4] ss:$16 sps:$4 sm:$0xff]  }
  0x33   : > { %v689_v62 = vld [vmem:[%s846_s26 + $0xc] ss:$16 sps:$4 sm:$0xff]   ;;  %v691_v63 = vld [vmem:[%s846_s26] ss:$16 sps:$4 sm:$0xff]   ;;  %v692_v0 = vld [vmem:[%s846_s26 + $0x8] ss:$16 sps:$4 sm:$0xff]  }
  0x34   : > { %427 = vmatpush1.bf16.msra.mxu0 %v661_v43  ;;  %468 = vmatpush1.bf16.msra.mxu1 %v662_v44  ;;  %v229_v1 = vld [vmem:[%s899_s1] sm:$0xf]  ;;  %s584_s30 = sshll.u32 %s905_s29, 3 }
  0x35   : > { %428 = vmatprep.subr.bf16.mxu0 %v663_v45  ;;  %469 = vmatprep.subr.bf16.mxu1 %v665_v46  ;;  %s226_s5 = scalar_lea.vmem %s900_s2, %s584_s30 }
  0x38   : > { %429 = vmatpush1.bf16.msra.mxu0 %v667_v47  ;;  %470 = vmatpush1.bf16.msra.mxu1 %v668_v48 }
  0x39   : > { %430 = vmatprep.subr.bf16.mxu0 %v669_v49  ;;  %471 = vmatprep.subr.bf16.mxu1 %v671_v50 }
  0x3c   : > { %431 = vmatpush1.bf16.msra.mxu0 %v673_v51  ;;  %472 = vmatpush1.bf16.msra.mxu1 %v674_v52 }
  0x3d   : > { %432 = vmatprep.subr.bf16.mxu0 %v675_v53  ;;  %473 = vmatprep.subr.bf16.mxu1 %v677_v54 }
  0x40   : > { %433 = vmatpush1.bf16.msra.mxu0 %v679_v55  ;;  %474 = vmatpush1.bf16.msra.mxu1 %v680_v56 }
  0x41   : > { %434 = vmatprep.subr.bf16.mxu0 %v681_v57  ;;  %475 = vmatprep.subr.bf16.mxu1 %v683_v58 }
  0x44   : > { %435 = vmatpush1.bf16.msra.mxu0 %v685_v59  ;;  %476 = vmatpush1.bf16.msra.mxu1 %v686_v60 }
  0x45   : > { %436 = vmatprep.subr.bf16.mxu0 %v687_v61  ;;  %477 = vmatprep.subr.bf16.mxu1 %v689_v62 }
  0x48   : > { %437 = vmatpush1.bf16.msra.mxu0 %v691_v63  ;;  %478 = vmatpush1.bf16.msra.mxu1 %v692_v0 }
  0x4b   : > { %455 = vmatmul.mubr.bf16.vlgmr.msra.gmra.mxu0 %v229_v1  ;;  %496 = vmatmul.mubr.bf16.vlgmr.msra.gmra.mxu1 %v229_v1 }
 0x10b   : > { %v456_v2 = vpop.f32.mrf.mxu0  ;;  %v497_v3 = vpop.f32.mrf.mxu1 }
 0x10c   : > { %693 = vtanh.f32 %v456_v2 }
 0x10d   : > { %695 = vtanh.f32 %v497_v3  ;;  %v458_v4 = vpop.f32.mrf.mxu0  ;;  %v499_v5 = vpop.f32.mrf.mxu1 }
 0x10e   : > { %697 = vtanh.f32 %v458_v4 }
 0x10f   : > { %699 = vtanh.f32 %v499_v5  ;;  %v460_v6 = vpop.f32.mrf.mxu0  ;;  %v501_v7 = vpop.f32.mrf.mxu1 }
 0x111   : > { %v461_v8 = vpop.f32.mrf.mxu0  ;;  %v502_v9 = vpop.f32.mrf.mxu1 }
 0x119   : > { %v694_v10 = vpop.eup %693 }
 0x11a   : > { %v696_v11 = vpop.eup %695  ;;  %508 = vst [vmem:[%s226_s5] sm:$0xff] %v694_v10 }
 0x11b   : > { %v698_v12 = vpop.eup %697  ;;  %510 = vst [vmem:[%s226_s5 + $0x10] sm:$0xff] %v696_v11 }
 0x11c   : > { %v700_v13 = vpop.eup %699  ;;  %509 = vst [vmem:[%s226_s5 + $0x8] sm:$0xff] %v698_v12 }
 0x11d   : > { %511 = vst [vmem:[%s226_s5 + $0x18] sm:$0xff] %v700_v13 }
 0x11e PF: > { %p9_p9 = scmp.ge.s32.totalorder %s758_s13, 6   ;;  %s901_s9 = smov %s719_s10 }
 0x11f   : > { %s902_s10 = smov %s767_s16  ;;  %s903_s11 = smov %s758_s13 }
 0x120   :  { %11 = sbr.rel (!%p9_p9) target bundleno = 2 (0x2), region = 86 }

</bundles_post_ra>
